<compile_context>
chip_gen: v7x
topology: tpu7x:2x2x1
jax: 0.10.0
libtpu: 0.0.40
codegen_flags: <defaults>
</compile_context>

<pallas_src>
import functools

import numpy as np
import jax
import jax.numpy as jnp
from jax import lax
from jax.experimental import pallas as pl
from jax.experimental.pallas import tpu as pltpu


# ---------------------------------------------------------------------------
# Kernel A: fused nearest-2x upsample + 3x3 conv (4 phase matmuls) + BN sums
# ---------------------------------------------------------------------------
def _make_upconv_kernel(TH, W, C_in, C_out):
    def kernel(x_ref, w_ref, o_ref, sum_ref, ssq_ref):
        # x_ref  : (1, H+2, W+2, C_in)  whole padded sample (resident across slab axis)
        # w_ref  : (4, 4*C_in, C_out)   effective 2x2 weights per output phase
        # o_ref  : (1, C_out, 4*TH*W)   conv-out slab, channel-first, lane-dense
        # sum_ref: (1, 1, 1, C_out)     per-(sample, slab) partial sum       (f32)
        # ssq_ref: (1, 1, 1, C_out)     per-(sample, slab) partial sum-of-sq (f32)
        s = pl.program_id(1)
        row0 = pl.multiple_of(s * TH, TH)
        xs = x_ref[0, pl.ds(row0, TH + 2)]              # (TH+2, W+2, C_in), compute dtype

        acc_sum = jnp.zeros((C_out,), jnp.float32)
        acc_ssq = jnp.zeros((C_out,), jnp.float32)
        phases = []
        for dh in (0, 1):
            for dw in (0, 1):
                # 2x2 taps of this phase concatenated on the channel (lane) axis
                # -> ONE MXU matmul per phase with contraction dim K = 4*C_in.
                pieces = [xs[dh + a:dh + a + TH, dw + b:dw + b + W, :]
                          for a in (0, 1) for b in (0, 1)]
                patches = jnp.concatenate(pieces, axis=-1).reshape(TH * W, 4 * C_in)
                ph = jnp.dot(patches, w_ref[2 * dh + dw],
                             preferred_element_type=jnp.float32)   # (TH*W, C_out) f32
                # per-phase stats, taken in f32 while the result is hot
                acc_sum = acc_sum + jnp.sum(ph, axis=0)
                acc_ssq = acc_ssq + jnp.sum(ph * ph, axis=0)
                # cast to the (bf16) output dtype BEFORE any interleave/transpose
                phases.append(ph.astype(o_ref.dtype).reshape(TH, W, C_out))

        sum_ref[...] = acc_sum.reshape(1, 1, 1, C_out)
        ssq_ref[...] = acc_ssq.reshape(1, 1, 1, C_out)

        # per-slab interleave of the 4 phases (small, output dtype), then a single
        # small transpose for the channel-first, lane-dense store.
        r0 = jnp.stack([phases[0], phases[1]], axis=2).reshape(TH, 2 * W, C_out)
        r1 = jnp.stack([phases[2], phases[3]], axis=2).reshape(TH, 2 * W, C_out)
        y = jnp.stack([r0, r1], axis=1).reshape(4 * TH * W, C_out)
        o_ref[0] = y.T                                   # (C_out, 4*TH*W)

    return kernel


# ---------------------------------------------------------------------------
# Kernel B: tiled BatchNorm apply (scale * y + shift) + ReLU, lane-dense blocks
# ---------------------------------------------------------------------------
def _bn_relu_apply_kernel(y_ref, scale_ref, shift_ref, o_ref):
    # y_ref/o_ref: (1, C_out, TP) (bf16 or f32); scale/shift: (C_out, 1) f32
    y = y_ref[0].astype(jnp.float32)
    o_ref[0] = jnp.maximum(y * scale_ref[...] + shift_ref[...], 0.0).astype(o_ref.dtype)


# ---------------------------------------------------------------------------
# Weight preprocessing: fold the nearest-2x upsample into 4 phase kernels
# ---------------------------------------------------------------------------
def _phase_weights(weight, compute_dtype):
    """PyTorch (C_out, C_in, 3, 3) -> (4, 4*C_in, C_out) effective 2x2 phase weights."""
    C_out, C_in = weight.shape[0], weight.shape[1]
    w = jnp.transpose(weight, (2, 3, 1, 0))                    # (kh, kw, C_in, C_out)
    rows = [jnp.stack([w[0], w[1] + w[2]], axis=0),            # dh = 0 -> taps a = 0, 1
            jnp.stack([w[0] + w[1], w[2]], axis=0)]            # dh = 1
    w_eff = []
    for dh in (0, 1):
        r = rows[dh]                                           # (2, 3, C_in, C_out): [a, kw]
        cols = [jnp.stack([r[:, 0], r[:, 1] + r[:, 2]], axis=1),   # dw = 0 -> [a, b]
                jnp.stack([r[:, 0] + r[:, 1], r[:, 2]], axis=1)]   # dw = 1
        for dw in (0, 1):
            w_eff.append(cols[dw].reshape(4 * C_in, C_out))    # flatten (a, b, ci)
    return jnp.stack(w_eff, axis=0).astype(compute_dtype)      # (4, 4*C_in, C_out)


def _pick_slab_rows(H, W, C_out, itemsize, target_bytes=2 << 20):
    """Largest TH dividing H with (4*TH*W) % 128 == 0 whose double-buffered
    output slab fits target_bytes (falls back to smallest valid, then H)."""
    cands = [t for t in range(H, 0, -1) if H % t == 0 and (4 * t * W) % 128 == 0]
    if not cands:
        return H
    for t in cands:
        if 2 * C_out * 4 * t * W * itemsize <= target_bytes:
            return t
    return cands[-1]


def _pick_spatial_chunk(P, C_out, itemsize, budget_bytes=16 << 20):
    """Lane-dense (multiple-of-128) chunk dividing P, sized from a VMEM byte budget
    (in + out, double-buffered)."""
    denom = max(1, 4 * C_out * itemsize)
    cap = max(128, (budget_bytes // denom) // 128 * 128)
    if P <= cap or P % 128 != 0:
        return P   # TODO(synk): P not a multiple of 128 falls back to whole-sample blocks
    for t in range(cap, 127, -128):
        if P % t == 0:
            return t
    return P


# ---------------------------------------------------------------------------
# Wrapper: NCHW in -> NCHW out (matches PyTorch up_conv.forward, train-mode BN)
# ---------------------------------------------------------------------------
@functools.partial(jax.jit, static_argnames=("compute_dtype", "slab_rows"))
def up_conv_forward(x_nchw, weight, bias, gamma, beta, *,
                    compute_dtype=jnp.bfloat16, slab_rows=None):
    """x: (N, C_in, H, W); weight: (C_out, C_in, 3, 3) (PyTorch layout).

    `bias` is accepted for parameter parity but intentionally unused: a per-channel
    constant before batch-statistics BatchNorm is exactly cancelled by the mean
    subtraction (it only affects the unmodeled running-mean buffer).
    """
    del bias
    N, C_in, H, W = x_nchw.shape
    C_out = weight.shape[0]
    H2, W2 = 2 * H, 2 * W
    P = H2 * W2
    eps = 1e-5

    inter_dtype = (jnp.float32 if np.dtype(compute_dtype) == np.dtype(jnp.float32)
                   else jnp.bfloat16)
    isz = np.dtype(inter_dtype).itemsize

    # small glue at ORIGINAL resolution (cast first so the transpose/pad move bf16 bytes)
    x_nhwc = jnp.transpose(x_nchw.astype(compute_dtype), (0, 2, 3, 1))
    x_pad = jnp.pad(x_nhwc, ((0, 0), (1, 1), (1, 1), (0, 0)))
    w_eff = _phase_weights(weight, compute_dtype)              # (4, 4*C_in, C_out)

    TH = None
    if slab_rows is not None and H % slab_rows == 0 and (4 * slab_rows * W) % 128 == 0:
        TH = slab_rows
    if TH is None:
        TH = _pick_slab_rows(H, W, C_out, isz)
    S = H // TH
    PS = 4 * TH * W                                            # flat output spatial / slab

    # --- kernel A: fused upsample + conv3x3, slab-tiled, + per-slab BN partials ---
    conv_out, psum, pssq = pl.pallas_call(
        _make_upconv_kernel(TH, W, C_in, C_out),
        out_shape=(
            jax.ShapeDtypeStruct((N, C_out, P), inter_dtype),
            jax.ShapeDtypeStruct((N, S, 1, C_out), jnp.float32),
            jax.ShapeDtypeStruct((N, S, 1, C_out), jnp.float32),
        ),
        grid=(N, S),
        in_specs=[
            pl.BlockSpec((1, H + 2, W + 2, C_in), lambda n, s: (n, 0, 0, 0)),
            pl.BlockSpec((4, 4 * C_in, C_out), lambda n, s: (0, 0, 0)),
        ],
        out_specs=(
            pl.BlockSpec((1, C_out, PS), lambda n, s: (n, 0, s)),
            pl.BlockSpec((1, 1, 1, C_out), lambda n, s: (n, s, 0, 0)),
            pl.BlockSpec((1, 1, 1, C_out), lambda n, s: (n, s, 0, 0)),
        ),
        compiler_params=pltpu.CompilerParams(
            dimension_semantics=("parallel", "parallel"),
            vmem_limit_bytes=48 * 1024 * 1024,
        ),
    )(x_pad, w_eff)

    # --- tiny XLA reduction of the per-slab partials -> BN scale/shift (f32) ---------
    cnt = N * P
    mean = jnp.sum(psum, axis=(0, 1)).reshape(C_out) / cnt
    var = jnp.maximum(jnp.sum(pssq, axis=(0, 1)).reshape(C_out) / cnt - mean * mean, 0.0)
    # TODO(synk): for very large N*H*W a shifted/Welford accumulation would be more robust.
    inv = gamma.astype(jnp.float32) * lax.rsqrt(var + eps)
    scale = inv.reshape(C_out, 1)
    shift = (beta.astype(jnp.float32) - mean * inv).reshape(C_out, 1)

    # --- kernel B: tiled, lane-dense BN-apply + ReLU, aliased in place ----------------
    TP = _pick_spatial_chunk(P, C_out, isz)
    out_flat = pl.pallas_call(
        _bn_relu_apply_kernel,
        out_shape=jax.ShapeDtypeStruct((N, C_out, P), inter_dtype),
        grid=(N, P // TP),
        in_specs=[
            pl.BlockSpec((1, C_out, TP), lambda n, s: (n, 0, s)),
            pl.BlockSpec((C_out, 1), lambda n, s: (0, 0)),
            pl.BlockSpec((C_out, 1), lambda n, s: (0, 0)),
        ],
        out_specs=pl.BlockSpec((1, C_out, TP), lambda n, s: (n, 0, s)),
        input_output_aliases={0: 0},
        compiler_params=pltpu.CompilerParams(
            dimension_semantics=("parallel", "parallel"),
            vmem_limit_bytes=48 * 1024 * 1024,
        ),
    )(conv_out, scale, shift)

    # free reshape of the channel-first flat layout back to NCHW
    return out_flat.reshape(N, C_out, H2, W2)


# ---------------------------------------------------------------------------
# Pure-JAX reference for the correctness check
# ---------------------------------------------------------------------------
def up_conv_reference(x_nchw, weight, bias, gamma, beta):
    x = jnp.transpose(x_nchw, (0, 2, 3, 1))
    x_up = jnp.repeat(jnp.repeat(x, 2, axis=1), 2, axis=2)
    w_hwio = jnp.transpose(weight, (2, 3, 1, 0))               # (kh, kw, ci, co)
    y = lax.conv_general_dilated(
        x_up, w_hwio, window_strides=(1, 1), padding="SAME",
        dimension_numbers=("NHWC", "HWIO", "NHWC")) + bias
    mean = jnp.mean(y, axis=(0, 1, 2), keepdims=True)
    var = jnp.mean((y - mean) ** 2, axis=(0, 1, 2), keepdims=True)
    out = (y - mean) * lax.rsqrt(var + 1e-5) * gamma + beta
    out = jnp.maximum(out, 0.0)
    return jnp.transpose(out, (0, 3, 1, 2))


if __name__ == "__main__":
    N, C_in, C_out, H, W = 2, 4, 8, 16, 16

    key = jax.random.PRNGKey(0)
    k_x, k_w, k_b, k_g, k_be = jax.random.split(key, 5)

    x = jax.random.normal(k_x, (N, C_in, H, W), dtype=jnp.float32)
    weight = 0.1 * jax.random.normal(k_w, (C_out, C_in, 3, 3), dtype=jnp.float32)
    bias = 0.1 * jax.random.normal(k_b, (C_out,), dtype=jnp.float32)
    gamma = 1.0 + 0.1 * jax.random.normal(k_g, (C_out,), dtype=jnp.float32)
    beta = 0.1 * jax.random.normal(k_be, (C_out,), dtype=jnp.float32)

    ref = jax.block_until_ready(up_conv_reference(x, weight, bias, gamma, beta))

    # f32 path, forced multi-slab tiling (exercises slab stores + partial-stat reduce)
    out_f32 = jax.block_until_ready(
        up_conv_forward(x, weight, bias, gamma, beta,
                        compute_dtype=jnp.float32, slab_rows=4))
    assert out_f32.shape == (N, C_out, 2 * H, 2 * W), out_f32.shape
    err_f32 = float(jnp.max(jnp.abs(out_f32.astype(jnp.float32) - ref)))
    assert err_f32 < 2e-3, err_f32

    # default bf16 MXU path (bf16 intermediate / output) -- bf16-appropriate tolerance
    out_bf16 = jax.block_until_ready(up_conv_forward(x, weight, bias, gamma, beta))
    assert out_bf16.shape == (N, C_out, 2 * H, 2 * W), out_bf16.shape
    err_bf16 = float(jnp.max(jnp.abs(out_bf16.astype(jnp.float32) - ref)))
    assert err_bf16 < 8e-2, err_bf16

    print("KERNEL_OK")
</pallas_src>

<mosaic_0001>
module attributes {stable_mosaic.version = 11 : i64} {
  func.func @kernel(%arg0: i32, %arg1: i32, %arg2: memref<1x18x18x4xf32, #tpu.memory_space<vmem>>, %arg3: memref<4x16x8xf32, #tpu.memory_space<vmem>>, %arg4: memref<1x8x256xf32, #tpu.memory_space<vmem>>, %arg5: memref<1x1x1x8xf32, #tpu.memory_space<vmem>>, %arg6: memref<1x1x1x8xf32, #tpu.memory_space<vmem>>) attributes {dimension_semantics = [#tpu.dimension_semantics<parallel>, #tpu.dimension_semantics<parallel>], iteration_bounds = array<i64: 2, 4>, scalar_prefetch = 0 : i64, scratch_operands = 0 : i64, tpu.core_type = #tpu.core_type<tc>, window_params = [{transform_indices = @transform_0, window_bounds = array<i64: 1, 18, 18, 4>}, {pipeline_mode = #tpu.pipeline_mode<synchronous>, transform_indices = @transform_1, window_bounds = array<i64: 4, 16, 8>}, {transform_indices = @transform_2, window_bounds = array<i64: 1, 8, 256>}, {transform_indices = @transform_3, window_bounds = array<i64: 1, 1, 1, 8>}, {transform_indices = @transform_4, window_bounds = array<i64: 1, 1, 1, 8>}]} {
    %c4_i32 = arith.constant 4 : i32
    %0 = arith.muli %arg1, %c4_i32 : i32
    %1 = tpu.assume_multiple %0, 4 : i32
    %c0 = arith.constant 0 : index
    %2 = arith.index_cast %1 : i32 to index
    %c0_0 = arith.constant 0 : index
    %c0_1 = arith.constant 0 : index
    %3 = vector.load %arg2[%c0, %2, %c0_0, %c0_1] : memref<1x18x18x4xf32, #tpu.memory_space<vmem>>, vector<1x6x18x4xf32>
    %4 = vector.shape_cast %3 : vector<1x6x18x4xf32> to vector<6x18x4xf32>
    %cst = arith.constant 0.000000e+00 : f32
    %5 = vector.broadcast %cst : f32 to vector<8xf32>
    %cst_2 = arith.constant 0.000000e+00 : f32
    %6 = vector.broadcast %cst_2 : f32 to vector<8xf32>
    %7 = vector.extract_strided_slice %4 {offsets = [0, 0, 0], sizes = [4, 16, 4], strides = [1, 1, 1]} : vector<6x18x4xf32> to vector<4x16x4xf32>
    %8 = vector.extract_strided_slice %4 {offsets = [0, 1, 0], sizes = [4, 16, 4], strides = [1, 1, 1]} : vector<6x18x4xf32> to vector<4x16x4xf32>
    %9 = vector.extract_strided_slice %4 {offsets = [1, 0, 0], sizes = [4, 16, 4], strides = [1, 1, 1]} : vector<6x18x4xf32> to vector<4x16x4xf32>
    %10 = vector.extract_strided_slice %4 {offsets = [1, 1, 0], sizes = [4, 16, 4], strides = [1, 1, 1]} : vector<6x18x4xf32> to vector<4x16x4xf32>
    %11 = tpu.concatenate %7, %8, %9, %10 in 2 : vector<4x16x4xf32>, vector<4x16x4xf32>, vector<4x16x4xf32>, vector<4x16x4xf32> -> vector<4x16x16xf32>
    %12 = vector.shape_cast %11 : vector<4x16x16xf32> to vector<64x16xf32>
    %c0_3 = arith.constant 0 : index
    %c0_4 = arith.constant 0 : index
    %c0_5 = arith.constant 0 : index
    %13 = vector.load %arg3[%c0_3, %c0_4, %c0_5] : memref<4x16x8xf32, #tpu.memory_space<vmem>>, vector<1x16x8xf32>
    %14 = vector.shape_cast %13 : vector<1x16x8xf32> to vector<16x8xf32>
    %cst_6 = arith.constant dense<0.000000e+00> : vector<64x8xf32>
    %15 = tpu.matmul %12, %14, %cst_6 {dimension_numbers = #tpu.dot_dimension_numbers<[1], [0], [0], [1], [0, 0, 1, 1], [], []>} : vector<64x16xf32>, vector<16x8xf32>, vector<64x8xf32> -> vector<64x8xf32>
    %cst_7 = arith.constant dense<0.000000e+00> : vector<8xf32>
    %16 = vector.multi_reduction <add>, %15, %cst_7 [0] : vector<64x8xf32> to vector<8xf32>
    %17 = arith.addf %5, %16 : vector<8xf32>
    %18 = arith.mulf %15, %15 : vector<64x8xf32>
    %cst_8 = arith.constant dense<0.000000e+00> : vector<8xf32>
    %19 = vector.multi_reduction <add>, %18, %cst_8 [0] : vector<64x8xf32> to vector<8xf32>
    %20 = arith.addf %6, %19 : vector<8xf32>
    %21 = vector.shape_cast %15 : vector<64x8xf32> to vector<4x16x8xf32>
    %22 = vector.extract_strided_slice %4 {offsets = [0, 1, 0], sizes = [4, 16, 4], strides = [1, 1, 1]} : vector<6x18x4xf32> to vector<4x16x4xf32>
    %23 = vector.extract_strided_slice %4 {offsets = [0, 2, 0], sizes = [4, 16, 4], strides = [1, 1, 1]} : vector<6x18x4xf32> to vector<4x16x4xf32>
    %24 = vector.extract_strided_slice %4 {offsets = [1, 1, 0], sizes = [4, 16, 4], strides = [1, 1, 1]} : vector<6x18x4xf32> to vector<4x16x4xf32>
    %25 = vector.extract_strided_slice %4 {offsets = [1, 2, 0], sizes = [4, 16, 4], strides = [1, 1, 1]} : vector<6x18x4xf32> to vector<4x16x4xf32>
    %26 = tpu.concatenate %22, %23, %24, %25 in 2 : vector<4x16x4xf32>, vector<4x16x4xf32>, vector<4x16x4xf32>, vector<4x16x4xf32> -> vector<4x16x16xf32>
    %27 = vector.shape_cast %26 : vector<4x16x16xf32> to vector<64x16xf32>
    %c1 = arith.constant 1 : index
    %c0_9 = arith.constant 0 : index
    %c0_10 = arith.constant 0 : index
    %28 = vector.load %arg3[%c1, %c0_9, %c0_10] : memref<4x16x8xf32, #tpu.memory_space<vmem>>, vector<1x16x8xf32>
    %29 = vector.shape_cast %28 : vector<1x16x8xf32> to vector<16x8xf32>
    %cst_11 = arith.constant dense<0.000000e+00> : vector<64x8xf32>
    %30 = tpu.matmul %27, %29, %cst_11 {dimension_numbers = #tpu.dot_dimension_numbers<[1], [0], [0], [1], [0, 0, 1, 1], [], []>} : vector<64x16xf32>, vector<16x8xf32>, vector<64x8xf32> -> vector<64x8xf32>
    %cst_12 = arith.constant dense<0.000000e+00> : vector<8xf32>
    %31 = vector.multi_reduction <add>, %30, %cst_12 [0] : vector<64x8xf32> to vector<8xf32>
    %32 = arith.addf %17, %31 : vector<8xf32>
    %33 = arith.mulf %30, %30 : vector<64x8xf32>
    %cst_13 = arith.constant dense<0.000000e+00> : vector<8xf32>
    %34 = vector.multi_reduction <add>, %33, %cst_13 [0] : vector<64x8xf32> to vector<8xf32>
    %35 = arith.addf %20, %34 : vector<8xf32>
    %36 = vector.shape_cast %30 : vector<64x8xf32> to vector<4x16x8xf32>
    %37 = vector.extract_strided_slice %4 {offsets = [1, 0, 0], sizes = [4, 16, 4], strides = [1, 1, 1]} : vector<6x18x4xf32> to vector<4x16x4xf32>
    %38 = vector.extract_strided_slice %4 {offsets = [1, 1, 0], sizes = [4, 16, 4], strides = [1, 1, 1]} : vector<6x18x4xf32> to vector<4x16x4xf32>
    %39 = vector.extract_strided_slice %4 {offsets = [2, 0, 0], sizes = [4, 16, 4], strides = [1, 1, 1]} : vector<6x18x4xf32> to vector<4x16x4xf32>
    %40 = vector.extract_strided_slice %4 {offsets = [2, 1, 0], sizes = [4, 16, 4], strides = [1, 1, 1]} : vector<6x18x4xf32> to vector<4x16x4xf32>
    %41 = tpu.concatenate %37, %38, %39, %40 in 2 : vector<4x16x4xf32>, vector<4x16x4xf32>, vector<4x16x4xf32>, vector<4x16x4xf32> -> vector<4x16x16xf32>
    %42 = vector.shape_cast %41 : vector<4x16x16xf32> to vector<64x16xf32>
    %c2 = arith.constant 2 : index
    %c0_14 = arith.constant 0 : index
    %c0_15 = arith.constant 0 : index
    %43 = vector.load %arg3[%c2, %c0_14, %c0_15] : memref<4x16x8xf32, #tpu.memory_space<vmem>>, vector<1x16x8xf32>
    %44 = vector.shape_cast %43 : vector<1x16x8xf32> to vector<16x8xf32>
    %cst_16 = arith.constant dense<0.000000e+00> : vector<64x8xf32>
    %45 = tpu.matmul %42, %44, %cst_16 {dimension_numbers = #tpu.dot_dimension_numbers<[1], [0], [0], [1], [0, 0, 1, 1], [], []>} : vector<64x16xf32>, vector<16x8xf32>, vector<64x8xf32> -> vector<64x8xf32>
    %cst_17 = arith.constant dense<0.000000e+00> : vector<8xf32>
    %46 = vector.multi_reduction <add>, %45, %cst_17 [0] : vector<64x8xf32> to vector<8xf32>
    %47 = arith.addf %32, %46 : vector<8xf32>
    %48 = arith.mulf %45, %45 : vector<64x8xf32>
    %cst_18 = arith.constant dense<0.000000e+00> : vector<8xf32>
    %49 = vector.multi_reduction <add>, %48, %cst_18 [0] : vector<64x8xf32> to vector<8xf32>
    %50 = arith.addf %35, %49 : vector<8xf32>
    %51 = vector.shape_cast %45 : vector<64x8xf32> to vector<4x16x8xf32>
    %52 = vector.extract_strided_slice %4 {offsets = [1, 1, 0], sizes = [4, 16, 4], strides = [1, 1, 1]} : vector<6x18x4xf32> to vector<4x16x4xf32>
    %53 = vector.extract_strided_slice %4 {offsets = [1, 2, 0], sizes = [4, 16, 4], strides = [1, 1, 1]} : vector<6x18x4xf32> to vector<4x16x4xf32>
    %54 = vector.extract_strided_slice %4 {offsets = [2, 1, 0], sizes = [4, 16, 4], strides = [1, 1, 1]} : vector<6x18x4xf32> to vector<4x16x4xf32>
    %55 = vector.extract_strided_slice %4 {offsets = [2, 2, 0], sizes = [4, 16, 4], strides = [1, 1, 1]} : vector<6x18x4xf32> to vector<4x16x4xf32>
    %56 = tpu.concatenate %52, %53, %54, %55 in 2 : vector<4x16x4xf32>, vector<4x16x4xf32>, vector<4x16x4xf32>, vector<4x16x4xf32> -> vector<4x16x16xf32>
    %57 = vector.shape_cast %56 : vector<4x16x16xf32> to vector<64x16xf32>
    %c3 = arith.constant 3 : index
    %c0_19 = arith.constant 0 : index
    %c0_20 = arith.constant 0 : index
    %58 = vector.load %arg3[%c3, %c0_19, %c0_20] : memref<4x16x8xf32, #tpu.memory_space<vmem>>, vector<1x16x8xf32>
    %59 = vector.shape_cast %58 : vector<1x16x8xf32> to vector<16x8xf32>
    %cst_21 = arith.constant dense<0.000000e+00> : vector<64x8xf32>
    %60 = tpu.matmul %57, %59, %cst_21 {dimension_numbers = #tpu.dot_dimension_numbers<[1], [0], [0], [1], [0, 0, 1, 1], [], []>} : vector<64x16xf32>, vector<16x8xf32>, vector<64x8xf32> -> vector<64x8xf32>
    %cst_22 = arith.constant dense<0.000000e+00> : vector<8xf32>
    %61 = vector.multi_reduction <add>, %60, %cst_22 [0] : vector<64x8xf32> to vector<8xf32>
    %62 = arith.addf %47, %61 : vector<8xf32>
    %63 = arith.mulf %60, %60 : vector<64x8xf32>
    %cst_23 = arith.constant dense<0.000000e+00> : vector<8xf32>
    %64 = vector.multi_reduction <add>, %63, %cst_23 [0] : vector<64x8xf32> to vector<8xf32>
    %65 = arith.addf %50, %64 : vector<8xf32>
    %66 = vector.shape_cast %60 : vector<64x8xf32> to vector<4x16x8xf32>
    %67 = vector.shape_cast %62 : vector<8xf32> to vector<1x1x1x8xf32>
    %c0_24 = arith.constant 0 : index
    %c0_25 = arith.constant 0 : index
    %c0_26 = arith.constant 0 : index
    %c0_27 = arith.constant 0 : index
    %68 = vector.load %arg5[%c0_24, %c0_25, %c0_26, %c0_27] : memref<1x1x1x8xf32, #tpu.memory_space<vmem>>, vector<1x1x1x8xf32>
    tpu.vector_store %arg5[%c0_24, %c0_25, %c0_26, %c0_27], %67 {strides = array<i32>} : memref<1x1x1x8xf32, #tpu.memory_space<vmem>>, vector<1x1x1x8xf32>,
    %69 = vector.shape_cast %65 : vector<8xf32> to vector<1x1x1x8xf32>
    %c0_28 = arith.constant 0 : index
    %c0_29 = arith.constant 0 : index
    %c0_30 = arith.constant 0 : index
    %c0_31 = arith.constant 0 : index
    %70 = vector.load %arg6[%c0_28, %c0_29, %c0_30, %c0_31] : memref<1x1x1x8xf32, #tpu.memory_space<vmem>>, vector<1x1x1x8xf32>
    tpu.vector_store %arg6[%c0_28, %c0_29, %c0_30, %c0_31], %69 {strides = array<i32>} : memref<1x1x1x8xf32, #tpu.memory_space<vmem>>, vector<1x1x1x8xf32>,
    %71 = vector.shape_cast %21 : vector<4x16x8xf32> to vector<4x16x1x8xf32>
    %72 = vector.shape_cast %36 : vector<4x16x8xf32> to vector<4x16x1x8xf32>
    %73 = tpu.concatenate %71, %72 in 2 : vector<4x16x1x8xf32>, vector<4x16x1x8xf32> -> vector<4x16x2x8xf32>
    %74 = vector.shape_cast %73 : vector<4x16x2x8xf32> to vector<4x32x8xf32>
    %75 = vector.shape_cast %51 : vector<4x16x8xf32> to vector<4x16x1x8xf32>
    %76 = vector.shape_cast %66 : vector<4x16x8xf32> to vector<4x16x1x8xf32>
    %77 = tpu.concatenate %75, %76 in 2 : vector<4x16x1x8xf32>, vector<4x16x1x8xf32> -> vector<4x16x2x8xf32>
    %78 = vector.shape_cast %77 : vector<4x16x2x8xf32> to vector<4x32x8xf32>
    %79 = vector.shape_cast %74 : vector<4x32x8xf32> to vector<4x1x32x8xf32>
    %80 = vector.shape_cast %78 : vector<4x32x8xf32> to vector<4x1x32x8xf32>
    %81 = tpu.concatenate %79, %80 in 1 : vector<4x1x32x8xf32>, vector<4x1x32x8xf32> -> vector<4x2x32x8xf32>
    %82 = vector.shape_cast %81 : vector<4x2x32x8xf32> to vector<256x8xf32>
    %83 = tpu.transpose %82, [1, 0] : vector<256x8xf32> -> vector<8x256xf32>
    %c0_32 = arith.constant 0 : index
    %c0_33 = arith.constant 0 : index
    %c0_34 = arith.constant 0 : index
    %84 = vector.load %arg4[%c0_32, %c0_33, %c0_34] : memref<1x8x256xf32, #tpu.memory_space<vmem>>, vector<1x8x256xf32>
    %85 = vector.shape_cast %84 : vector<1x8x256xf32> to vector<8x256xf32>
    %86 = vector.shape_cast %83 : vector<8x256xf32> to vector<1x8x256xf32>
    tpu.vector_store %arg4[%c0_32, %c0_33, %c0_34], %86 {strides = array<i32>} : memref<1x8x256xf32, #tpu.memory_space<vmem>>, vector<1x8x256xf32>,
    return
  }
  func.func @transform_0(%arg0: i32, %arg1: i32) -> (i32, i32, i32, i32) {
    %c0_i32 = arith.constant 0 : i32
    %c0_i32_0 = arith.constant 0 : i32
    %c0_i32_1 = arith.constant 0 : i32
    %c0_i32_2 = arith.constant 0 : i32
    return %arg0, %c0_i32, %c0_i32_0, %c0_i32_1 : i32, i32, i32, i32
  }
  func.func @transform_1(%arg0: i32, %arg1: i32) -> (i32, i32, i32) {
    %c0_i32 = arith.constant 0 : i32
    %c0_i32_0 = arith.constant 0 : i32
    %c0_i32_1 = arith.constant 0 : i32
    %c0_i32_2 = arith.constant 0 : i32
    return %c0_i32, %c0_i32_0, %c0_i32_1 : i32, i32, i32
  }
  func.func @transform_2(%arg0: i32, %arg1: i32) -> (i32, i32, i32) {
    %c0_i32 = arith.constant 0 : i32
    %c0_i32_0 = arith.constant 0 : i32
    return %arg0, %c0_i32, %arg1 : i32, i32, i32
  }
  func.func @transform_3(%arg0: i32, %arg1: i32) -> (i32, i32, i32, i32) {
    %c0_i32 = arith.constant 0 : i32
    %c0_i32_0 = arith.constant 0 : i32
    %c0_i32_1 = arith.constant 0 : i32
    return %arg0, %arg1, %c0_i32, %c0_i32_0 : i32, i32, i32, i32
  }
  func.func @transform_4(%arg0: i32, %arg1: i32) -> (i32, i32, i32, i32) {
    %c0_i32 = arith.constant 0 : i32
    %c0_i32_0 = arith.constant 0 : i32
    %c0_i32_1 = arith.constant 0 : i32
    return %arg0, %arg1, %c0_i32, %c0_i32_0 : i32, i32, i32, i32
  }
}

module attributes {stable_mosaic.version = 11 : i64} {
  func.func @_bn_relu_apply_kernel(%arg0: i32, %arg1: i32, %arg2: memref<1x8x1024xf32, #tpu.memory_space<vmem>>, %arg3: memref<8x1xf32, #tpu.memory_space<vmem>>, %arg4: memref<8x1xf32, #tpu.memory_space<vmem>>, %arg5: memref<1x8x1024xf32, #tpu.memory_space<vmem>>) attributes {dimension_semantics = [#tpu.dimension_semantics<parallel>, #tpu.dimension_semantics<parallel>], iteration_bounds = array<i64: 2, 1>, scalar_prefetch = 0 : i64, scratch_operands = 0 : i64, tpu.core_type = #tpu.core_type<tc>, window_params = [{transform_indices = @transform_0, window_bounds = array<i64: 1, 8, 1024>}, {pipeline_mode = #tpu.pipeline_mode<synchronous>, transform_indices = @transform_1, window_bounds = array<i64: 8, 1>}, {pipeline_mode = #tpu.pipeline_mode<synchronous>, transform_indices = @transform_2, window_bounds = array<i64: 8, 1>}, {transform_indices = @transform_3, window_bounds = array<i64: 1, 8, 1024>}]} {
    %c0 = arith.constant 0 : index
    %c0_0 = arith.constant 0 : index
    %c0_1 = arith.constant 0 : index
    %0 = vector.load %arg2[%c0, %c0_0, %c0_1] : memref<1x8x1024xf32, #tpu.memory_space<vmem>>, vector<1x8x1024xf32>
    %1 = vector.shape_cast %0 : vector<1x8x1024xf32> to vector<8x1024xf32>
    %c0_2 = arith.constant 0 : index
    %c0_3 = arith.constant 0 : index
    %2 = vector.load %arg3[%c0_2, %c0_3] : memref<8x1xf32, #tpu.memory_space<vmem>>, vector<8x1xf32>
    %3 = vector.broadcast %2 : vector<8x1xf32> to vector<8x1024xf32>
    %4 = arith.mulf %1, %3 : vector<8x1024xf32>
    %c0_4 = arith.constant 0 : index
    %c0_5 = arith.constant 0 : index
    %5 = vector.load %arg4[%c0_4, %c0_5] : memref<8x1xf32, #tpu.memory_space<vmem>>, vector<8x1xf32>
    %6 = vector.broadcast %5 : vector<8x1xf32> to vector<8x1024xf32>
    %7 = arith.addf %4, %6 : vector<8x1024xf32>
    %cst = arith.constant 0.000000e+00 : f32
    %8 = vector.broadcast %cst : f32 to vector<8x1024xf32>
    %9 = arith.maximumf %7, %8 : vector<8x1024xf32>
    %c0_6 = arith.constant 0 : index
    %c0_7 = arith.constant 0 : index
    %c0_8 = arith.constant 0 : index
    %10 = vector.load %arg5[%c0_6, %c0_7, %c0_8] : memref<1x8x1024xf32, #tpu.memory_space<vmem>>, vector<1x8x1024xf32>
    %11 = vector.shape_cast %10 : vector<1x8x1024xf32> to vector<8x1024xf32>
    %12 = vector.shape_cast %9 : vector<8x1024xf32> to vector<1x8x1024xf32>
    tpu.vector_store %arg5[%c0_6, %c0_7, %c0_8], %12 {strides = array<i32>} : memref<1x8x1024xf32, #tpu.memory_space<vmem>>, vector<1x8x1024xf32>,
    return
  }
  func.func @transform_0(%arg0: i32, %arg1: i32) -> (i32, i32, i32) {
    %c0_i32 = arith.constant 0 : i32
    %c0_i32_0 = arith.constant 0 : i32
    return %arg0, %c0_i32, %arg1 : i32, i32, i32
  }
  func.func @transform_1(%arg0: i32, %arg1: i32) -> (i32, i32) {
    %c0_i32 = arith.constant 0 : i32
    %c0_i32_0 = arith.constant 0 : i32
    %c0_i32_1 = arith.constant 0 : i32
    return %c0_i32, %c0_i32_0 : i32, i32
  }
  func.func @transform_2(%arg0: i32, %arg1: i32) -> (i32, i32) {
    %c0_i32 = arith.constant 0 : i32
    %c0_i32_0 = arith.constant 0 : i32
    %c0_i32_1 = arith.constant 0 : i32
    return %c0_i32, %c0_i32_0 : i32, i32
  }
  func.func @transform_3(%arg0: i32, %arg1: i32) -> (i32, i32, i32) {
    %c0_i32 = arith.constant 0 : i32
    %c0_i32_0 = arith.constant 0 : i32
    return %arg0, %c0_i32, %arg1 : i32, i32, i32
  }
}

</mosaic_0001>

<bundles_post_ra>
// kernel: up_conv_forward.3
= control target key start
LH: loop header
LB: loop body
LE: loop exit
PB: predicated region body
PF: predicated region fallthrough
CT: control target
= control target key end

     0   :  { %s433_s12 = smov 0   ;;  %s435_s13 = smov 0   ;;  %s472_s0 = inlined_call_operand.vmem [shape: f32[2,8,1024], index: 0, kind: input, shape index: {}, may-alias: {0,3}]   ;;  %s473_s1 = inlined_call_operand.vmem [shape: f32[8,1], index: 1, kind: input, shape index: {}]   ;;  %s474_s2 = inlined_call_operand.vmem [shape: f32[8,1], index: 2, kind: input, shape index: {}]   ;;  %s475_s3 = inlined_call_operand.vmem [shape: f32[2,8,1024], index: 3, kind: output, shape index: {}, may-alias: {0,3}]  }
   0x1   :  { %s437_s14 = smov 0  }
   0x2 LB: > { %s25_s15 = sadd.s32 1, %s406_s13  ;;  %p353_p0 = scmp.ge.s32.totalorder %s410_s14, 1  ;;  %s410_s14 = sphi %s437_s14, %s13_s14   ;;  %s406_s13 = sphi %s435_s13, %s477_s13   ;;  %s402_s12 = sphi %s433_s12, %s476_s12  }
   0x3   : > { %p27_p1 = scmp.ge.s32.totalorder %s25_s15, 2  ;;  %p158_p2 = scmp.lt.s32.totalorder %s410_s14, 3 }
   0x5   : > { %s479_s15 = smov (%p27_p1, %s25_s15), 0  ;;  %p159_p3 = pnand %p353_p0, %p158_p2 }
   0x6   : > { %v218_v0 = vld [vmem:[%s473_s1] sm:$0xff] (!%p159_p3)  ;;  %v412_v1 = vmov (!%p159_p3), 0   ;;  %p191_p4 = scmp.lt.s32.totalorder (!%p159_p3), %s402_s12, 1 }
   0x7   : > { %162 = sbr.rel (%p159_p3) target bundleno = 148 (0x94), region = 32  ;;  %387 = vset.pattern.permute.xlu0 (!%p159_p3), %v412_v1  ;;  %v232_v2 = vld [vmem:[%s474_s2] sm:$0xff] (!%p159_p3) }
   0x8   : > { %221 = vperm.xlu0 (!%p159_p3), %387, %v218_v0  }
   0xc   : > { %235 = vperm.xlu0 (!%p159_p3), %387, %v232_v2  }
   0xe   : > { %s481_s12 = smov (!%p191_p4, %s402_s12), 1 }
   0xf   : > { %s360_s20 = sshll.u32 %s481_s12, 6 }
  0x10   : > { %s198_s23 = scalar_lea.vmem %s472_s0, %s360_s20  ;;  %s208_s26 = scalar_lea.vmem %s475_s3, %s360_s20 }
  0x11   : > { %v210_v3 = vld [vmem:[%s198_s23] sm:$0xff]  ;;  %v211_v4 = vld [vmem:[%s198_s23 + $0x8] sm:$0xff]  ;;  %v212_v6 = vld [vmem:[%s198_s23 + $0x10] sm:$0xff] }
  0x12   : > { %v213_v7 = vld [vmem:[%s198_s23 + $0x18] sm:$0xff]  ;;  %v214_v8 = vld [vmem:[%s198_s23 + $0x20] sm:$0xff]  ;;  %v215_v9 = vld [vmem:[%s198_s23 + $0x28] sm:$0xff] }
  0x13   : > { %v216_v10 = vld [vmem:[%s198_s23 + $0x30] sm:$0xff]  ;;  %v217_v11 = vld [vmem:[%s198_s23 + $0x38] sm:$0xff] }
  0x87   : > { %v222_v5 = vpop.permute.xlu0 %221 }
  0x88   : > { %v224_v12 = vmul.f32 %v222_v5, %v210_v3  ;;  %v225_v13 = vmul.f32 %v222_v5, %v211_v4  ;;  %v226_v14 = vmul.f32 %v222_v5, %v212_v6  ;;  %v227_v15 = vmul.f32 %v222_v5, %v213_v7 }
  0x89   : > { %v228_v17 = vmul.f32 %v222_v5, %v214_v8  ;;  %v229_v18 = vmul.f32 %v222_v5, %v215_v9  ;;  %v230_v19 = vmul.f32 %v222_v5, %v216_v10  ;;  %v231_v20 = vmul.f32 %v222_v5, %v217_v11 }
  0x8b   : > { %v236_v16 = vpop.permute.xlu0 %235 }
  0x8c   : > { %v238_v21 = vadd.f32 %v236_v16, %v224_v12  ;;  %v239_v22 = vadd.f32 %v236_v16, %v225_v13  ;;  %v240_v23 = vadd.f32 %v236_v16, %v226_v14  ;;  %v241_v24 = vadd.f32 %v236_v16, %v227_v15 }
  0x8d   : > { %v242_v25 = vadd.f32 %v236_v16, %v228_v17  ;;  %v243_v26 = vadd.f32 %v236_v16, %v229_v18  ;;  %v244_v27 = vadd.f32 %v236_v16, %v230_v19  ;;  %v245_v28 = vadd.f32 %v236_v16, %v231_v20 }
  0x8e   : > { %v246_v29 = vmax.f32 %v238_v21, 0.0  ;;  %v247_v30 = vmax.f32 %v239_v22, 0.0  ;;  %v248_v31 = vmax.f32 %v240_v23, 0.0  ;;  %v249_v32 = vmax.f32 %v241_v24, 0.0 }
  0x8f   : > { %v250_v33 = vmax.f32 %v242_v25, 0.0  ;;  %v251_v34 = vmax.f32 %v243_v26, 0.0  ;;  %v252_v35 = vmax.f32 %v244_v27, 0.0  ;;  %v253_v36 = vmax.f32 %v245_v28, 0.0 }
  0x90   : > { %254 = vst [vmem:[%s208_s26] sm:$0xff] %v246_v29  ;;  %255 = vst [vmem:[%s208_s26 + $0x8] sm:$0xff] %v247_v30 }
  0x91   : > { %256 = vst [vmem:[%s208_s26 + $0x10] sm:$0xff] %v248_v31  ;;  %257 = vst [vmem:[%s208_s26 + $0x18] sm:$0xff] %v249_v32 }
  0x92   : > { %258 = vst [vmem:[%s208_s26 + $0x20] sm:$0xff] %v250_v33  ;;  %259 = vst [vmem:[%s208_s26 + $0x28] sm:$0xff] %v251_v34 }
  0x93   : > { %260 = vst [vmem:[%s208_s26 + $0x30] sm:$0xff] %v252_v35  ;;  %261 = vst [vmem:[%s208_s26 + $0x38] sm:$0xff] %v253_v36 }
  0x94 PF: > { %s13_s14 = sadd.s32 1, %s410_s14   ;;  %s476_s12 = smov %s406_s13 }
  0x95   : > { %p10_p5 = scmp.ge.s32.totalorder %s13_s14, 4   ;;  %s477_s13 = smov %s479_s15 }
  0x97   :  { %12 = sbr.rel (!%p10_p5) target bundleno = 2 (0x2), region = 62 }

// kernel: up_conv_forward.2
= control target key start
LH: loop header
LB: loop body
LE: loop exit
PB: predicated region body
PF: predicated region fallthrough
CT: control target
= control target key end

     0   :  { %s4958_s15 = smov 0   ;;  %s4960_s16 = smov 0   ;;  %s7329_s0 = inlined_call_operand.vmem [shape: f32[2,18,18,4], index: 0, kind: input, shape index: {}]   ;;  %s7330_s1 = inlined_call_operand.vmem [shape: f32[4,16,8], index: 1, kind: input, shape index: {}]   ;;  %s7331_s2 = inlined_call_operand.vmem [shape: f32[2,8,1024], index: 2, kind: output, shape index: {0}]   ;;  %s7332_s3 = inlined_call_operand.vmem [shape: f32[2,4,1,8], index: 3, kind: output, shape index: {1}]   ;;  %s7333_s4 = inlined_call_operand.vmem [shape: f32[2,4,1,8], index: 4, kind: output, shape index: {2}]  }
   0x1   :  { %s4962_s17 = smov 0   ;;  %s4964_s18 = smov 0  }
   0x2   :  { %s4966_s19 = smov 0  }
   0x3 LB: > { %s24_s20 = sadd.s32 1, %s4918_s17  ;;  %s27_s21 = sadd.s32 1, %s4922_s18  ;;  %s4926_s19 = sphi %s4966_s19, %s15_s19   ;;  %s4922_s18 = sphi %s4964_s18, %s7700_s18   ;;  %s4918_s17 = sphi %s4962_s17, %s7699_s17   ;;  %s4914_s16 = sphi %s4960_s16, %s7698_s16   ;;  %s4910_s15 = sphi %s4958_s15, %s7697_s15  }
   0x4   : > { %p25_p0 = scmp.ge.s32.totalorder %s24_s20, 4  ;;  %p4673_p1 = scmp.ge.s32.totalorder %s4926_s19, 1 }
   0x5   : > { %p185_p2 = scmp.lt.s32.totalorder %s4926_s19, 9 }
   0x6   : > { %s7702_s20 = smov (%p25_p0, %s24_s20), 0  ;;  %s7704_s21 = smov (!%p25_p0, %s27_s21), %s4922_s18 }
   0x7   : > { %p186_p3 = pnand %p4673_p1, %p185_p2  ;;  %p29_p4 = scmp.ge.s32.totalorder %s7704_s21, 2 }
   0x9   : > { %s7706_s21 = smov (%p29_p4, %s7704_s21), 0  ;;  %189 = sbr.rel (%p186_p3) target bundleno = 705 (0x2c1), region = 28 }
  0x10   : > { %p229_p5 = scmp.lt.s32.totalorder %s4914_s16, 1  ;;  %s4681_s22 = smul.u32 96, %s4910_s15  ;;  %v419_v0 = vld [vmem:[%s7330_s1] sm:$0xff]  ;;  %v420_v1 = vld [vmem:[%s7330_s1 + $0x8] sm:$0xff]  ;;  %vm291_vm0 = vcmask 1046528   ;;  %v4690_v15 = vld [vmem:[%s7330_s1 + $0x10] sm:$0xff] }
  0x11   : > { %v4826_v2 = vpack.c.bf16 %v420_v1, %v419_v0  ;;  %s4928_s6 = smov 8   ;;  %s4929_s7 = smov 4   ;;  %v4691_v16 = vld [vmem:[%s7330_s1 + $0x18] sm:$0xff]  ;;  %v4710_v38 = vld [vmem:[%s7330_s1 + $0x30] sm:$0xff]  ;;  %v4700_v41 = vld [vmem:[%s7330_s1 + $0x20] sm:$0xff]  ;;  %vm392_vm1 = vcmask 31744  }
  0x12   : > { %s7708_s16 = smov (!%p229_p5, %s4914_s16), 1  ;;  %v4830_v19 = vpack.c.bf16 %v4691_v16, %v4690_v15  ;;  %s4930_s12 = smov 12   ;;  %v4711_v39 = vld [vmem:[%s7330_s1 + $0x38] sm:$0xff]  ;;  %v4701_v42 = vld [vmem:[%s7330_s1 + $0x28] sm:$0xff]  ;;  %vm401_vm2 = vcmask 64512   ;;  %vm410_vm3 = vcmask 97280  }
  0x13   : > { %s4842_s23 = smul.u32 432, %s7708_s16  ;;  %4827 = vmatprep.subr.bf16.mxu0 %v4826_v2  ;;  %v5108_v40 = vpack.c.bf16 %v4711_v39, %v4710_v38  ;;  %v4834_v44 = vpack.c.bf16 %v4701_v42, %v4700_v41  ;;  %vm421_vm4 = vcmask 130048   ;;  %vm2418_vm5 = vcmask 1040384   ;;  %p246_p6 = scmp.lt.s32.totalorder %s4910_s15, 3 }
  0x14   : > { %4829 = vmatpush3.bf16.msra.mxu0 %v4826_v2  ;;  %4831 = vmatprep.subr.bf16.mxu1 %v4830_v19  ;;  %vm1231_vm6 = vcmask 57344   ;;  %s4678_s29 = sshll.u32 %s7708_s16, 2  ;;  %s4675_s11 = sshll.u32 %s4910_s15, 1 }
  0x15   : > { %s233_s30 = scalar_lea.vmem %s7329_s0, %s4842_s23  ;;  %4833 = vmatpush3.bf16.msra.mxu1 %v4830_v19  ;;  %4835 = vmatprep.subr.bf16.mxu0 %v4834_v44  ;;  %p237_p7 = scmp.lt.s32.totalorder %s4675_s11, 7 }
  0x16   : > { %s5003_s5 = scalar_lea.vmem %s233_s30, %s4681_s22  ;;  %4839 = vmatprep.subr.bf16.mxu1 %v5108_v40 }
  0x17   : > { %v5006_v3 = vld [vmem:[%s5003_s5 + $0x18] sm:$0xff]  ;;  %v5009_v4 = vld [vmem:[%s5003_s5 + $0x10] sm:$0x3]  ;;  %v5015_v6 = vld [vmem:[%s5003_s5] sm:$0xff]  ;;  %s247_s28 = scalar_select %p246_p6, %s4910_s15, 3 }
  0x18   : > { %338 = vrot.lane.b32.xlu1 %v5006_v3, %s4928_s6  ;;  %v295_v5 = vrot.slane %v5009_v4, 1  ;;  %v5018_v7 = vld [vmem:[%s5003_s5 + $0x8] sm:$0xff]  ;;  %v5021_v8 = vld [vmem:[%s5003_s5 + $0x20] sm:$0xff]  ;;  %v292_v9 = vrot.slane %v5015_v6, 1  ;;  %v297_v12 = vrot.slane %v5006_v3, 1  ;;  %v5052_v22 = vld [vmem:[%s5003_s5 + $0x30] sm:$0xff] }
  0x19   : > { %v293_v10 = vrot.slane %v5018_v7, 1  ;;  %v298_v13 = vrot.slane %v5021_v8, 1  ;;  %v5032_v14 = vld [vmem:[%s5003_s5 + $0x28] sm:$0x3]  ;;  %v5056_v23 = vld [vmem:[%s5003_s5 + $0x38] sm:$0xff]  ;;  %v302_v27 = vrot.slane %v5052_v22, 1  ;;  %s6695_s30 = sadd.s32 %s4678_s29, %s247_s28 }
  0x1a   : > { %603 = vrot.lane.b32.xlu0 %v295_v5, %s4929_s7  ;;  %v300_v17 = vrot.slane %v5032_v14, 1  ;;  %v5059_v24 = vld [vmem:[%s5003_s5 + $0x40] sm:$0x3]  ;;  %v303_v25 = vrot.slane %v5056_v23, 1  ;;  %v5078_v30 = vld [vmem:[%s5003_s5 + $0x50] sm:$0xff]  ;;  %v5081_v31 = vld [vmem:[%s5003_s5 + $0x48] sm:$0xff]  ;;  %s257_s10 = scalar_lea.vmem %s7333_s4, %s6695_s30 }
  0x1b   : > { %v294_v11 = vsel %vm291_vm0, %v292_v9, %v293_v10  ;;  %v296_v18 = vsel %vm291_vm0, %v293_v10, %v295_v5  ;;  %v299_v20 = vsel %vm291_vm0, %v297_v12, %v298_v13  ;;  %v305_v26 = vrot.slane %v5059_v24, 1  ;;  %v5090_v34 = vld [vmem:[%s5003_s5 + $0x58] sm:$0x3]  ;;  %v5119_v43 = vld [vmem:[%s5003_s5 + $0x60] sm:$0xff]  ;;  %v5123_v45 = vld [vmem:[%s5003_s5 + $0x68] sm:$0xff]  ;;  %s7710_s11 = smov (!%p237_p7, %s4675_s11), 7 }
  0x1c   : > { %340 = vrot.lane.b32.xlu1 %v5021_v8, %s4928_s6  ;;  %v301_v21 = vsel %vm291_vm0, %v298_v13, %v300_v17  ;;  %v304_v29 = vsel %vm291_vm0, %v302_v27, %v303_v25  ;;  %v308_v32 = vrot.slane %v5078_v30, 1  ;;  %v307_v33 = vrot.slane %v5081_v31, 1  ;;  %v5126_v46 = vld [vmem:[%s5003_s5 + $0x70] sm:$0x3]  ;;  %v277_v52 = vld [vmem:[%s5003_s5 + $0x80] sm:$0xff]  ;;  %v276_v53 = vld [vmem:[%s5003_s5 + $0x78] sm:$0xff] }
  0x1d   : > { %v306_v28 = vsel %vm291_vm0, %v303_v25, %v305_v26  ;;  %v310_v36 = vrot.slane %v5090_v34, 1  ;;  %v364_v47 = vrot.slane %v5123_v45, 1  ;;  %v366_v48 = vrot.slane %v5126_v46, 1  ;;  %v278_v56 = vld [vmem:[%s5003_s5 + $0x88] sm:$0x3] }
  0x1e   : > { %312 = vrot.lane.b32.xlu0 %v294_v11, %s4929_s7  ;;  %v309_v35 = vsel %vm291_vm0, %v307_v33, %v308_v32  ;;  %v363_v49 = vrot.slane %v5119_v43, 1  ;;  %v866_v54 = vrot.slane %v276_v53, 1  ;;  %v867_v55 = vrot.slane %v277_v52, 1 }
  0x1f   : > { %v311_v37 = vsel %vm291_vm0, %v308_v32, %v310_v36  ;;  %v367_v50 = vsel %vm291_vm0, %v364_v47, %v366_v48  ;;  %v869_v58 = vrot.slane %v278_v56, 1 }
  0x20   : > { %615 = vrot.lane.b32.xlu1 %v5032_v14, %s4928_s6  ;;  %v365_v51 = vsel %vm291_vm0, %v363_v49, %v364_v47  ;;  %v868_v57 = vsel %vm291_vm0, %v866_v54, %v867_v55 }
  0x21   : > { %v870_v59 = vsel %vm291_vm0, %v867_v55, %v869_v58 }
  0x22   : > { %314 = vrot.lane.b32.xlu0 %v296_v18, %s4929_s7 }
  0x24   : > { %368 = vrot.lane.b32.xlu1 %v299_v20, %s4930_s12 }
  0x26   : > { %370 = vrot.lane.b32.xlu0 %v301_v21, %s4930_s12 }
  0x28   : > { %316 = vrot.lane.b32.xlu1 %v299_v20, %s4929_s7 }
  0x2a   : > { %627 = vrot.lane.b32.xlu0 %v300_v17, %s4930_s12 }
  0x2c   : > { %342 = vrot.lane.b32.xlu1 %v5052_v22, %s4928_s6 }
  0x2e   : > { %318 = vrot.lane.b32.xlu0 %v301_v21, %s4929_s7 }
  0x30   : > { %605 = vrot.lane.b32.xlu1 %v300_v17, %s4929_s7 }
  0x32   : > { %344 = vrot.lane.b32.xlu0 %v5056_v23, %s4928_s6 }
  0x34   : > { %374 = vrot.lane.b32.xlu1 %v306_v28, %s4930_s12 }
  0x36   : > { %372 = vrot.lane.b32.xlu0 %v304_v29, %s4930_s12 }
  0x38   : > { %629 = vrot.lane.b32.xlu1 %v305_v26, %s4930_s12 }
  0x3a   : > { %617 = vrot.lane.b32.xlu0 %v5059_v24, %s4928_s6 }
  0x3c   : > { %322 = vrot.lane.b32.xlu1 %v306_v28, %s4929_s7 }
  0x3e   : > { %320 = vrot.lane.b32.xlu0 %v304_v29, %s4929_s7 }
  0x40   : > { %348 = vrot.lane.b32.xlu1 %v5078_v30, %s4928_s6 }
  0x42   : > { %346 = vrot.lane.b32.xlu0 %v5081_v31, %s4928_s6 }
  0x44   : > { %376 = vrot.lane.b32.xlu1 %v309_v35, %s4930_s12 }
  0x46   : > { %607 = vrot.lane.b32.xlu0 %v305_v26, %s4929_s7 }
  0x48   : > { %619 = vrot.lane.b32.xlu1 %v5090_v34, %s4928_s6 }
  0x4a   : > { %378 = vrot.lane.b32.xlu0 %v311_v37, %s4930_s12 }
  0x4c   : > { %324 = vrot.lane.b32.xlu1 %v309_v35, %s4929_s7 }
  0x4e   : > { %631 = vrot.lane.b32.xlu0 %v310_v36, %s4930_s12 }
  0x50   : > { %350 = vrot.lane.b32.xlu1 %v5119_v43, %s4928_s6 }
  0x52   : > { %326 = vrot.lane.b32.xlu0 %v311_v37, %s4929_s7 }
  0x54   : > { %609 = vrot.lane.b32.xlu1 %v310_v36, %s4929_s7 }
  0x56   : > { %352 = vrot.lane.b32.xlu0 %v5123_v45, %s4928_s6 }
  0x58   : > { %382 = vrot.lane.b32.xlu1 %v367_v50, %s4930_s12 }
  0x5a   : > { %380 = vrot.lane.b32.xlu0 %v365_v51, %s4930_s12 }
  0x5c   : > { %633 = vrot.lane.b32.xlu1 %v366_v48, %s4930_s12 }
  0x5e   : > { %621 = vrot.lane.b32.xlu0 %v5126_v46, %s4928_s6 }
  0x60   : > { %853 = vrot.lane.b32.xlu1 %v367_v50, %s4929_s7 }
  0x62   : > { %851 = vrot.lane.b32.xlu0 %v365_v51, %s4929_s7 }
  0x64   : > { %861 = vrot.lane.b32.xlu1 %v277_v52, %s4928_s6 }
  0x66   : > { %859 = vrot.lane.b32.xlu0 %v276_v53, %s4928_s6 }
  0x68   : > { %871 = vrot.lane.b32.xlu1 %v868_v57, %s4930_s12 }
  0x6a   : > { %1049 = vrot.lane.b32.xlu0 %v366_v48, %s4929_s7  ;;  %s250_s7 = scalar_lea.vmem %s7332_s3, %s6695_s30 }
  0x6c   : > { %1052 = vrot.lane.b32.xlu1 %v278_v56, %s4928_s6 }
  0x6e   : > { %873 = vrot.lane.b32.xlu0 %v870_v59, %s4930_s12 }
  0x72   : > { %1055 = vrot.lane.b32.xlu0 %v869_v58, %s4930_s12  ;;  %s4676_s12 = sshll.u32 %s7708_s16, 3 }
  0x73   : > { %s240_s13 = sadd.s32 %s4676_s12, %s7710_s11 }
  0x74   : > { %s4677_s14 = sshll.u32 %s240_s13, 3 }
  0x75   : > { %s242_s24 = scalar_lea.vmem %s7331_s2, %s4677_s14 }
  0x8a   : > { %v339_v60 = vpop.permute.xlu1 %338 }
  0x8c   : > { %v604_v61 = vpop.permute.xlu0 %603 }
  0x8e   : > { %v341_v62 = vpop.permute.xlu1 %340 }
  0x90   : > { %v313_v63 = vpop.permute.xlu0 %312 }
  0x91   : > { %v393_v1 = vsel %vm392_vm1, %v5015_v6, %v313_v63 }
  0x92   : > { %v616_v0 = vpop.permute.xlu1 %615  ;;  %v402_v10 = vsel %vm401_vm2, %v393_v1, %v339_v60 }
  0x94   : > { %v315_v2 = vpop.permute.xlu0 %314 }
  0x95   : > { %v394_v5 = vsel %vm392_vm1, %v5018_v7, %v315_v2  ;;  %v639_v7 = vsel %vm392_vm1, %v5009_v4, %v604_v61 }
  0x96   : > { %v369_v9 = vpop.permute.xlu1 %368  ;;  %v403_v12 = vsel %vm401_vm2, %v394_v5, %v341_v62  ;;  %v643_v18 = vsel %vm401_vm2, %v639_v7, %v616_v0 }
  0x97   : > { %v411_v11 = vsel %vm410_vm3, %v402_v10, %v369_v9 }
  0x98   : > { %4766 = vmatprep.mubr.msk.f32.mxu0 %vm421_vm4, %v411_v11  ;;  %v371_v13 = vpop.permute.xlu0 %370  ;;  %v655_v6 = vrot.slane %v411_v11, 1 }
  0x99   : > { %v412_v15 = vsel %vm410_vm3, %v403_v12, %v371_v13 }
  0x9a   : > { %v656_v16 = vrot.slane %v412_v15, 1  ;;  %v317_v17 = vpop.permute.xlu1 %316  ;;  %4767 = vmatmul.mubr.msk.f32.vlgmr.msra.gmra.mrb[0].mxu0 %vm421_vm4, %v412_v15 }
  0x9b   : > { %4837 = vmatpush3.bf16.msra.mxu0 %v4834_v44  ;;  %v395_v33 = vsel %vm392_vm1, %v5006_v3, %v317_v17 }
  0x9c   : > { %v628_v19 = vpop.permute.xlu0 %627  ;;  %v657_v20 = vsel %vm291_vm0, %v655_v6, %v656_v16 }
  0x9d   : > { %v647_v21 = vsel %vm410_vm3, %v643_v18, %v628_v19  ;;  %4782 = vmatprep.mubr.msk.f32.mxu1 %vm421_vm4, %v657_v20 }
  0x9e   : > { %v658_v25 = vrot.slane %v647_v21, 1  ;;  %v343_v26 = vpop.permute.xlu1 %342 }
  0x9f   : > { %v404_v38 = vsel %vm401_vm2, %v395_v33, %v343_v26 }
  0xa0   : > { %v319_v27 = vpop.permute.xlu0 %318  ;;  %v659_v28 = vsel %vm291_vm0, %v656_v16, %v658_v25 }
  0xa1   : > { %4783 = vmatmul.mubr.msk.f32.vlgmr.msra.gmra.mrb[0].mxu1 %vm421_vm4, %v659_v28  ;;  %v396_v4 = vsel %vm392_vm1, %v5021_v8, %v319_v27 }
  0xa2   : > { %v606_v29 = vpop.permute.xlu1 %605  ;;  %4841 = vmatpush3.bf16.msra.mxu1 %v5108_v40 }
  0xa3   : > { %v640_v3 = vsel %vm392_vm1, %v5032_v14, %v606_v29 }
  0xa4   : > { %v345_v32 = vpop.permute.xlu0 %344 }
  0xa5   : > { %v405_v35 = vsel %vm401_vm2, %v396_v4, %v345_v32 }
  0xa6   : > { %v375_v36 = vpop.permute.xlu1 %374 }
  0xa7   : > { %v5183_v37 = vsel %vm410_vm3, %v405_v35, %v375_v36 }
  0xa8   : > { %v373_v39 = vpop.permute.xlu0 %372  ;;  %v661_v40 = vrot.slane %v5183_v37, 1 }
  0xa9   : > { %v413_v41 = vsel %vm410_vm3, %v404_v38, %v373_v39 }
  0xaa   : > { %v660_v42 = vrot.slane %v413_v41, 1  ;;  %v630_v44 = vpop.permute.xlu1 %629  ;;  %4769 = vmatprep.mubr.msk.f32.mxu0 %vm421_vm4, %v413_v41 }
  0xab   : > { %4770 = vmatmul.mubr.msk.f32.gmra.mrb[2].mxu0 %vm421_vm4, %v5183_v37 }
  0xac   : > { %v618_v8 = vpop.permute.xlu0 %617  ;;  %v5194_v47 = vsel %vm291_vm0, %v660_v42, %v661_v40 }
  0xad   : > { %v644_v48 = vsel %vm401_vm2, %v640_v3, %v618_v8  ;;  %4785 = vmatprep.mubr.msk.f32.mxu1 %vm421_vm4, %v5194_v47 }
  0xae   : > { %v648_v49 = vsel %vm410_vm3, %v644_v48, %v630_v44  ;;  %v323_v50 = vpop.permute.xlu1 %322 }
  0xaf   : > { %v663_v51 = vrot.slane %v648_v49, 1  ;;  %v398_v60 = vsel %vm392_vm1, %v5056_v23, %v323_v50 }
  0xb0   : > { %v321_v52 = vpop.permute.xlu0 %320 }
  0xb1   : > { %v5201_v53 = vsel %vm291_vm0, %v661_v40, %v663_v51  ;;  %v397_v14 = vsel %vm392_vm1, %v5052_v22, %v321_v52 }
  0xb2   : > { %v349_v54 = vpop.permute.xlu1 %348  ;;  %4786 = vmatmul.mubr.msk.f32.gmra.mrb[2].mxu1 %vm421_vm4, %v5201_v53 }
  0xb3   : > { %v407_v62 = vsel %vm401_vm2, %v398_v60, %v349_v54 }
  0xb4   : > { %v347_v55 = vpop.permute.xlu0 %346 }
  0xb5   : > { %v406_v56 = vsel %vm401_vm2, %v397_v14, %v347_v55 }
  0xb6   : > { %v377_v57 = vpop.permute.xlu1 %376 }
  0xb7   : > { %v415_v58 = vsel %vm410_vm3, %v406_v56, %v377_v57  ;;  %v4931_v56 = vmov 1966171168  }
  0xb8   : > { %4772 = vmatprep.mubr.msk.f32.mxu0 %vm421_vm4, %v415_v58  ;;  %v608_v59 = vpop.permute.xlu0 %607  ;;  %v665_v1 = vrot.slane %v415_v58, 1  ;;  %v1244_v57 = vunpack.c.l.s4 %v4931_v56 }
  0xb9   : > { %v641_v0 = vsel %vm392_vm1, %v5059_v24, %v608_v59 }
  0xba   : > { %v620_v61 = vpop.permute.xlu1 %619  ;;  %v1245_v59 = vunpack.c.0.s8 %v1244_v57 }
  0xbb   : > { %v645_v9 = vsel %vm401_vm2, %v641_v0, %v620_v61  ;;  %v4932_v61 = vmov 1983009808  }
  0xbc   : > { %v379_v63 = vpop.permute.xlu0 %378 }
  0xbd   : > { %v416_v22 = vsel %vm410_vm3, %v407_v62, %v379_v63  ;;  %v3862_v62 = vunpack.c.l.s4 %v4932_v61 }
  0xbe   : > { %v666_v2 = vrot.slane %v416_v22, 1  ;;  %v325_v5 = vpop.permute.xlu1 %324  ;;  %4773 = vmatmul.mubr.msk.f32.gmra.mrb[4].mxu0 %vm421_vm4, %v416_v22 }
  0xbf   : > { %v399_v7 = vsel %vm392_vm1, %v5081_v31, %v325_v5 }
  0xc0   : > { %v632_v10 = vpop.permute.xlu0 %631  ;;  %v667_v11 = vsel %vm291_vm0, %v665_v1, %v666_v2  ;;  %v3863_v1 = vunpack.c.0.s8 %v3862_v62 }
  0xc1   : > { %v649_v23 = vsel %vm410_vm3, %v645_v9, %v632_v10  ;;  %4788 = vmatprep.mubr.msk.f32.mxu1 %vm421_vm4, %v667_v11 }
  0xc2   : > { %v668_v12 = vrot.slane %v649_v23, 1  ;;  %v351_v13 = vpop.permute.xlu1 %350 }
  0xc3   : > { %v408_v21 = vsel %vm401_vm2, %v399_v7, %v351_v13 }
  0xc4   : > { %v327_v15 = vpop.permute.xlu0 %326  ;;  %v669_v24 = vsel %vm291_vm0, %v666_v2, %v668_v12 }
  0xc5   : > { %4789 = vmatmul.mubr.msk.f32.gmra.mrb[4].mxu1 %vm421_vm4, %v669_v24  ;;  %v400_v16 = vsel %vm392_vm1, %v5078_v30, %v327_v15 }
  0xc6   : > { %v610_v6 = vpop.permute.xlu1 %609 }
  0xc7   : > { %v642_v30 = vsel %vm392_vm1, %v5090_v34, %v610_v6 }
  0xc8   : > { %v353_v17 = vpop.permute.xlu0 %352 }
  0xc9   : > { %v409_v18 = vsel %vm401_vm2, %v400_v16, %v353_v17 }
  0xca   : > { %v383_v19 = vpop.permute.xlu1 %382 }
  0xcb   : > { %v418_v20 = vsel %vm410_vm3, %v409_v18, %v383_v19 }
  0xcc   : > { %v381_v25 = vpop.permute.xlu0 %380  ;;  %v671_v27 = vrot.slane %v418_v20, 1 }
  0xcd   : > { %v417_v26 = vsel %vm410_vm3, %v408_v21, %v381_v25 }
  0xce   : > { %v670_v28 = vrot.slane %v417_v26, 1  ;;  %4775 = vmatprep.mubr.msk.f32.mxu0 %vm421_vm4, %v417_v26  ;;  %v634_v29 = vpop.permute.xlu1 %633 }
  0xcf   : > { %4776 = vmatmul.mubr.msk.f32.gmra.mrb[6].mxu0 %vm421_vm4, %v418_v20 }
  0xd0   : > { %4798 = vmatprep.mubr.msk.f32.mxu0 %vm421_vm4, %v413_v41  ;;  %v622_v31 = vpop.permute.xlu0 %621  ;;  %v672_v4 = vsel %vm291_vm0, %v670_v28, %v671_v27 }
  0xd1   : > { %v646_v32 = vsel %vm401_vm2, %v642_v30, %v622_v31  ;;  %4791 = vmatprep.mubr.msk.f32.mxu1 %vm421_vm4, %v672_v4 }
  0xd2   : > { %v650_v33 = vsel %vm410_vm3, %v646_v32, %v634_v29  ;;  %v854_v35 = vpop.permute.xlu1 %853 }
  0xd3   : > { %v673_v36 = vrot.slane %v650_v33, 1  ;;  %4799 = vmatmul.mubr.msk.f32.vlgmr.msra.gmra.mrb[8].mxu0 %vm421_vm4, %v5183_v37 }
  0xd4   : > { %4801 = vmatprep.mubr.msk.f32.mxu0 %vm421_vm4, %v415_v58  ;;  %v852_v38 = vpop.permute.xlu0 %851  ;;  %v1246_v58 = vlaneseq }
  0xd5   : > { %v674_v34 = vsel %vm291_vm0, %v671_v27, %v673_v36  ;;  %v877_v39 = vsel %vm392_vm1, %v5119_v43, %v852_v38  ;;  %v878_v43 = vsel %vm392_vm1, %v5123_v45, %v854_v35 }
  0xd6   : > { %4792 = vmatmul.mubr.msk.f32.gmra.mrb[6].mxu1 %vm421_vm4, %v674_v34  ;;  %v862_v41 = vpop.permute.xlu1 %861  ;;  %v1247_v60 = vshrl.u32 %v1246_v58, 7 }
  0xd7   : > { %4802 = vmatmul.mubr.msk.f32.gmra.mrb[10].mxu0 %vm421_vm4, %v416_v22  ;;  %4814 = vmatprep.mubr.msk.f32.mxu1 %vm421_vm4, %v5194_v47  ;;  %v880_v8 = vsel %vm401_vm2, %v878_v43, %v862_v41 }
  0xd8   : > { %4804 = vmatprep.mubr.msk.f32.mxu0 %vm421_vm4, %v417_v26  ;;  %v860_v40 = vpop.permute.xlu0 %859  ;;  %v5274_v63 = vsub.s32 %v1245_v59, %v1247_v60  ;;  %v5276_v22 = vsub.s32 0, %v1247_v60  ;;  %v5297_v27 = vsub.s32 %v3863_v1, %v1247_v60 }
  0xd9   : > { %v879_v37 = vsel %vm401_vm2, %v877_v39, %v860_v40 }
  0xda   : > { %4815 = vmatmul.mubr.msk.f32.vlgmr.msra.gmra.mrb[8].mxu1 %vm421_vm4, %v5201_v53  ;;  %v872_v42 = vpop.permute.xlu1 %871 }
  0xdb   : > { %4805 = vmatmul.mubr.msk.f32.gmra.mrb[12].mxu0 %vm421_vm4, %v418_v20  ;;  %4817 = vmatprep.mubr.msk.f32.mxu1 %vm421_vm4, %v667_v11  ;;  %v881_v44 = vsel %vm410_vm3, %v879_v37, %v872_v42 }
  0xdc   : > { %v1050_v3 = vpop.permute.xlu0 %1049  ;;  %4807 = vmatprep.mubr.msk.f32.mxu0 %vm421_vm4, %v881_v44  ;;  %v1062_v45 = vrot.slane %v881_v44, 1 }
  0xdd   : > { %v1058_v47 = vsel %vm392_vm1, %v5126_v46, %v1050_v3 }
  0xde   : > { %4818 = vmatmul.mubr.msk.f32.gmra.mrb[10].mxu1 %vm421_vm4, %v669_v24  ;;  %v1053_v48 = vpop.permute.xlu1 %1052 }
  0xdf   : > { %4820 = vmatprep.mubr.msk.f32.mxu1 %vm421_vm4, %v672_v4  ;;  %v1059_v52 = vsel %vm401_vm2, %v1058_v47, %v1053_v48 }
  0xe0   : > { %v874_v49 = vpop.permute.xlu0 %873 }
  0xe1   : > { %v882_v50 = vsel %vm410_vm3, %v880_v8, %v874_v49 }
  0xe2   : > { %v1063_v51 = vrot.slane %v882_v50, 1  ;;  %4808 = vmatmul.mubr.msk.f32.gmra.mrb[14].mxu0 %vm421_vm4, %v882_v50  ;;  %4821 = vmatmul.mubr.msk.f32.gmra.mrb[12].mxu1 %vm421_vm4, %v674_v34 }
  0xe4   : > { %v1056_v53 = vpop.permute.xlu0 %1055  ;;  %v1064_v54 = vsel %vm291_vm0, %v1062_v45, %v1063_v51 }
  0xe5   : > { %v1060_v14 = vsel %vm410_vm3, %v1059_v52, %v1056_v53  ;;  %4823 = vmatprep.mubr.msk.f32.mxu1 %vm421_vm4, %v1064_v54 }
  0xe6   : > { %v1065_v46 = vrot.slane %v1060_v14, 1 }
  0xe8   : > { %v1066_v55 = vsel %vm291_vm0, %v1063_v51, %v1065_v46 }
  0xe9   : > { %4824 = vmatmul.mubr.msk.f32.gmra.mrb[14].mxu1 %vm421_vm4, %v1066_v55 }
 0x16d   : > { %v4768_v0 = vpop.f32.mrb[0].mxu0 }
 0x16e   : > { %v552_v2 = vsel %vm401_vm2, %v4768_v0, 0.0  ;;  %v574_v5 = vmul.f32 %v4768_v0, %v4768_v0  ;;  %v1291_v9 = vcombine.high %v4768_v0, %v4768_v0  ;;  %v1298_v10 = vrot.slane %v4768_v0, %v5274_v63  ;;  %v512_v11 = vpop.f32.mrb[1].mxu0 }
 0x16f   : > { %v551_v23 = vsel %vm401_vm2, %v512_v11, 0.0  ;;  %v573_v12 = vmul.f32 %v512_v11, %v512_v11  ;;  %v1242_v13 = vcombine.high %v512_v11, %v512_v11  ;;  %v1249_v15 = vrot.slane %v512_v11, %v5274_v63 }
 0x170   : > { %v582_v24 = vsel %vm401_vm2, %v574_v5, 0.0  ;;  %v1305_v6 = vrot.slane %v1291_v9, %v5274_v63  ;;  %v1306_v16 = vcombine.high %v1298_v10, %v1298_v10  ;;  %v5285_v17 = vrot.slane %v1298_v10, %v5274_v63 }
 0x171   : > { %v5287_v7 = vadd.f32 %v552_v2, %v551_v23  ;;  %v581_v18 = vsel %vm401_vm2, %v573_v12, 0.0  ;;  %v1256_v19 = vrot.slane %v1242_v13, %v5274_v63  ;;  %v1257_v20 = vcombine.high %v1249_v15, %v1249_v15 }
 0x172   : > { %v1307_v21 = vcombine.high %v1305_v6, %v1305_v6  ;;  %v5292_v25 = vrot.slane %v1305_v6, %v5274_v63  ;;  %v5295_v26 = vrot.slane %v1306_v16, %v5274_v63  ;;  %v5301_v29 = vadd.f32 %v582_v24, %v581_v18 }
 0x173   : > { %v1258_v30 = vcombine.high %v1256_v19, %v1256_v19  ;;  %v5304_v31 = vrot.slane %v1249_v15, %v5274_v63  ;;  %v5314_v35 = vrot.slane %v1256_v19, %v5274_v63  ;;  %v5317_v38 = vrot.slane %v1257_v20, %v5274_v63 }
 0x174   : > { %v5307_v4 = vrot.slane %v1307_v21, %v5274_v63  ;;  %v4784_v36 = vpop.f32.mrb[0].mxu1 }
 0x175   : > { %v5320_v34 = vrot.slane %v1258_v30, %v5274_v63  ;;  %v1287_v39 = vcombine.high %v5304_v31, %v5304_v31  ;;  %v800_v41 = vsel %vm401_vm2, %v4784_v36, 0.0  ;;  %v760_v40 = vpop.f32.mrb[1].mxu1  ;;  %v822_v37 = vmul.f32 %v4784_v36, %v4784_v36 }
 0x176   : > { %v1755_v42 = vcombine.high %v4784_v36, %v4784_v36  ;;  %v1762_v43 = vrot.slane %v4784_v36, %v5274_v63  ;;  %v799_v44 = vsel %vm401_vm2, %v760_v40, 0.0  ;;  %v821_v8 = vmul.f32 %v760_v40, %v760_v40 }
 0x177   : > { %v5327_v3 = vadd.f32 %v800_v41, %v799_v44  ;;  %v1706_v47 = vcombine.high %v760_v40, %v760_v40  ;;  %v1713_v48 = vrot.slane %v760_v40, %v5274_v63  ;;  %v830_v45 = vsel %vm401_vm2, %v822_v37, 0.0 }
 0x178   : > { %v1769_v49 = vrot.slane %v1755_v42, %v5274_v63  ;;  %v1770_v50 = vcombine.high %v1762_v43, %v1762_v43  ;;  %v5333_v51 = vrot.slane %v1762_v43, %v5274_v63  ;;  %v829_v52 = vsel %vm401_vm2, %v821_v8, 0.0 }
 0x179   : > { %v1720_v53 = vrot.slane %v1706_v47, %v5274_v63  ;;  %v1721_v54 = vcombine.high %v1713_v48, %v1713_v48  ;;  %v5338_v14 = vrot.slane %v1713_v48, %v5274_v63  ;;  %v1288_v58 = vcombine.high %v5314_v35, %v5314_v35 }
 0x17a   : > { %v1771_v46 = vcombine.high %v1769_v49, %v1769_v49  ;;  %v5341_v55 = vrot.slane %v1769_v49, %v5274_v63  ;;  %v5344_v56 = vrot.slane %v1770_v50, %v5274_v63  ;;  %v1800_v57 = vcombine.high %v5333_v51, %v5333_v51 }
 0x17b   : > { %v5350_v59 = vadd.f32 %v830_v45, %v829_v52  ;;  %v1722_v60 = vcombine.high %v1720_v53, %v1720_v53  ;;  %v5353_v61 = vrot.slane %v1720_v53, %v5274_v63  ;;  %v5370_v10 = vrot.slane %v1721_v54, %v5274_v63 }
 0x17c   : > { %v5356_v62 = vrot.slane %v1771_v46, %v5274_v63  ;;  %v5367_v9 = vrot.slane %v1800_v57, %v5276_v22  ;;  %v1751_v13 = vcombine.high %v5338_v14, %v5338_v14  ;;  %v2101_v18 = vrot.slane %v5338_v14, %v5276_v22 }
 0x17d   : > { %v5373_v11 = vrot.slane %v1722_v60, %v5274_v63  ;;  %v1752_v15 = vcombine.high %v5353_v61, %v5353_v61  ;;  %v1753_v6 = vcombine.high %v5370_v10, %v5370_v10  ;;  %v2117_v19 = vrot.slane %v5353_v61, %v5276_v22 }
 0x17e   : > { %v4771_v24 = vpop.f32.mrb[2].mxu0  ;;  %v1289_v5 = vcombine.high %v5317_v38, %v5317_v38  ;;  %v7456_v61 = vcombine.high %v5344_v56, %v5344_v56 }
 0x17f   : > { %v1754_v16 = vcombine.high %v5373_v11, %v5373_v11  ;;  %v522_v20 = vpop.f32.mrb[3].mxu0  ;;  %v576_v21 = vmul.f32 %v4771_v24, %v4771_v24  ;;  %v1389_v30 = vcombine.high %v4771_v24, %v4771_v24  ;;  %v1396_v36 = vrot.slane %v4771_v24, %v5274_v63 }
 0x180   : > { %v554_v41 = vsel %vm401_vm2, %v522_v20, 0.0  ;;  %v575_v37 = vmul.f32 %v522_v20, %v522_v20  ;;  %v1340_v42 = vcombine.high %v522_v20, %v522_v20  ;;  %v1347_v43 = vrot.slane %v522_v20, %v5274_v63 }
 0x181   : > { %v5394_v40 = vadd.f32 %v554_v41, %v5287_v7  ;;  %v5398_v44 = vsel %vm401_vm2, %v4771_v24, 0.0  ;;  %v1403_v8 = vrot.slane %v1389_v30, %v5274_v63  ;;  %v1404_v47 = vcombine.high %v1396_v36, %v1396_v36 }
 0x182   : > { %v5402_v48 = vrot.slane %v1396_v36, %v5274_v63  ;;  %v584_v45 = vsel %vm401_vm2, %v575_v37, 0.0  ;;  %v1354_v49 = vrot.slane %v1340_v42, %v5274_v63  ;;  %v1355_v50 = vcombine.high %v1347_v43, %v1347_v43 }
 0x183   : > { %v5407_v7 = vrot.slane %v1347_v43, %v5274_v63  ;;  %v5410_v52 = vsel %vm401_vm2, %v576_v21, 0.0  ;;  %v1405_v53 = vcombine.high %v1403_v8, %v1403_v8  ;;  %v5413_v54 = vrot.slane %v1403_v8, %v5274_v63 }
 0x184   : > { %7438 = vst [vmem:[#allocation2_spill] sm:$0xff] %v5402_v48  ;;  %v5416_v46 = vrot.slane %v1404_v47, %v5274_v63  ;;  %v5419_v57 = vadd.f32 %v584_v45, %v5301_v29  ;;  %v1356_v60 = vcombine.high %v1354_v49, %v1354_v49  ;;  %v5422_v24 = vrot.slane %v1354_v49, %v5274_v63 }
 0x185   : > { %7439 = vst [vmem:[#allocation3_spill] sm:$0xff] %v5407_v7  ;;  %7440 = vst [vmem:[#allocation4_spill] sm:$0xff] %v5413_v54  ;;  %v5425_v20 = vrot.slane %v1355_v50, %v5274_v63  ;;  %v4787_v30 = vpop.f32.mrb[2].mxu1  ;;  %v5428_v21 = vrot.slane %v1405_v53, %v5274_v63  ;;  %v2121_v2 = vrot.slane %v5373_v11, %v5276_v22 }
 0x186   : > { %7441 = vst [vmem:[#allocation5_spill] sm:$0xff] %v5416_v46  ;;  %7442 = vst [vmem:[#allocation6_spill] sm:$0xff] %v5422_v24  ;;  %v770_v37 = vpop.f32.mrb[3].mxu1  ;;  %v5437_v42 = vrot.slane %v1356_v60, %v5274_v63  ;;  %v824_v45 = vmul.f32 %v4787_v30, %v4787_v30  ;;  %v1853_v49 = vcombine.high %v4787_v30, %v4787_v30  ;;  %v5452_v43 = vsel %vm401_vm2, %v4787_v30, 0.0 }
 0x187   : > { %7443 = vst [vmem:[#allocation7_spill] sm:$0xff] %v5425_v20  ;;  %7444 = vst [vmem:[#allocation8_spill] sm:$0xff] %v5428_v21  ;;  %v1860_v50 = vrot.slane %v4787_v30, %v5274_v63  ;;  %v802_v53 = vsel %vm401_vm2, %v770_v37, 0.0  ;;  %v823_v60 = vmul.f32 %v770_v37, %v770_v37  ;;  %v1804_v29 = vcombine.high %v770_v37, %v770_v37 }
 0x188   : > { %7445 = vst [vmem:[#allocation9_spill] sm:$0xff] %v5437_v42  ;;  %v5448_v41 = vadd.f32 %v802_v53, %v5327_v3  ;;  %v1811_v36 = vrot.slane %v770_v37, %v5274_v63  ;;  %v1867_v8 = vrot.slane %v1853_v49, %v5274_v63  ;;  %v2125_v14 = vrot.slane %v1752_v15, %v5276_v22 }
 0x189   : > { %v1868_v47 = vcombine.high %v1860_v50, %v1860_v50  ;;  %v5456_v32 = vrot.slane %v1860_v50, %v5274_v63  ;;  %v832_v12 = vsel %vm401_vm2, %v823_v60, 0.0  ;;  %v1818_v23 = vrot.slane %v1804_v29, %v5274_v63 }
 0x18a   : > { %v1819_v0 = vcombine.high %v1811_v36, %v1811_v36  ;;  %v5461_v3 = vrot.slane %v1811_v36, %v5274_v63  ;;  %v1869_v53 = vcombine.high %v1867_v8, %v1867_v8  ;;  %v5464_v37 = vrot.slane %v1867_v8, %v5274_v63 }
 0x18b   : > { %7446 = vst [vmem:[#allocation10_spill] sm:$0xff] %v5456_v32  ;;  %v5467_v30 = vrot.slane %v1868_v47, %v5274_v63  ;;  %v1898_v49 = vcombine.high %v5456_v32, %v5456_v32  ;;  %v5472_v50 = vsel %vm401_vm2, %v824_v45, 0.0  ;;  %v5475_v60 = vadd.f32 %v832_v12, %v5350_v59 }
 0x18c   : > { %7447 = vst [vmem:[#allocation11_spill] sm:$0xff] %v5461_v3  ;;  %7448 = vst [vmem:[#allocation12_spill] sm:$0xff] %v5464_v37  ;;  %v1820_v29 = vcombine.high %v1818_v23, %v1818_v23  ;;  %v5478_v36 = vrot.slane %v1818_v23, %v5274_v63  ;;  %v5481_v33 = vrot.slane %v1869_v53, %v5274_v63 }
 0x18d   : > { %7449 = vst [vmem:[#allocation13_spill] sm:$0xff] %v5467_v30  ;;  %v5492_v12 = vrot.slane %v1898_v49, %v5276_v22  ;;  %v5495_v23 = vrot.slane %v1819_v0, %v5274_v63  ;;  %v1849_v45 = vcombine.high %v5461_v3, %v5461_v3  ;;  %v2105_v59 = vrot.slane %v5370_v10, %v5276_v22 }
 0x18e   : > { %7450 = vst [vmem:[#allocation14_spill] sm:$0xff] %v5478_v36  ;;  %7451 = vst [vmem:[#allocation15_spill] sm:$0xff] %v5481_v33  ;;  %v5498_v53 = vrot.slane %v1820_v29, %v5274_v63  ;;  %v2109_v0 = vrot.slane %v1751_v13, %v5276_v22  ;;  %v2113_v8 = vrot.slane %v1753_v6, %v5276_v22 }
 0x18f   : > { %7452 = vst [vmem:[#allocation16_spill] sm:$0xff] %v5492_v12  ;;  %7453 = vst [vmem:[#allocation17_spill] sm:$0xff] %v5495_v23  ;;  %v2419_v47 = vsel %vm2418_vm5, %v5304_v31, %v2101_v18  ;;  %v1290_v29 = vcombine.high %v5320_v34, %v5320_v34  ;;  %v2420_v13 = vsel %vm2418_vm5, %v5317_v38, %v2105_v59 }
 0x190   : > { %7454 = vst [vmem:[#allocation18_spill] sm:$0xff] %v5498_v53  ;;  %v2421_v10 = vsel %vm2418_vm5, %v1287_v39, %v2109_v0  ;;  %v2129_v6 = vrot.slane %v1754_v16, %v5276_v22  ;;  %v2422_v18 = vsel %vm2418_vm5, %v1289_v5, %v2113_v8  ;;  %v3859_v1 = vcombine.low %v2419_v47, %v2420_v13 }
 0x191   : > { %v4774_v28 = vpop.f32.mrb[4].mxu0  ;;  %v2423_v31 = vsel %vm2418_vm5, %v5314_v35, %v2117_v19  ;;  %v2424_v38 = vsel %vm2418_vm5, %v5320_v34, %v2121_v2  ;;  %v3860_v39 = vcombine.low %v2421_v10, %v2422_v18  ;;  %v2425_v15 = vsel %vm2418_vm5, %v1288_v58, %v2125_v14 }
 0x192   : > { %v5526_v49 = vpop.f32.mrb[5].mxu0  ;;  %v2426_v11 = vsel %vm2418_vm5, %v1290_v29, %v2129_v6  ;;  %v3876_v16 = vcombine.low %v2423_v31, %v2424_v38  ;;  %v5569_v5 = vrot.slane %v1849_v45, %v5276_v22  ;;  %v2145_v19 = vrot.slane %v7456_v61, %v5276_v22 }
 0x193   : > { %v3877_v8 = vcombine.low %v2425_v15, %v2426_v11  ;;  %v7457_v34 = vrot.slane %v5333_v51, %v5276_v22  ;;  %v3867_v58 = vrot.slane %v3859_v1, %v5297_v27  ;;  %v3874_v2 = vrot.slane %v3860_v39, %v5297_v27 }
 0x194   : > { %7455 = vst [vmem:[#allocation19_spill] sm:$0xff] %v5569_v5  ;;  %v7458_v47 = vrot.slane %v5344_v56, %v5276_v22  ;;  %v7459_v59 = vcombine.high %v5285_v17, %v5285_v17  ;;  %v3884_v29 = vrot.slane %v3876_v16, %v5297_v27  ;;  %v7460_v13 = vcombine.high %v5295_v26, %v5295_v26 }
 0x195   : > { %v2427_v35 = vsel %vm2418_vm5, %v5285_v17, %v7457_v34  ;;  %v3891_v1 = vrot.slane %v3877_v8, %v5297_v27  ;;  %v3875_v6 = vcombine.low %v3867_v58, %v3874_v2  ;;  %v5603_v17 = vsel %vm401_vm2, %v4774_v28, 0.0 }
 0x196   : > { %v2428_v45 = vsel %vm2418_vm5, %v5295_v26, %v7458_v47  ;;  %v2429_v0 = vsel %vm2418_vm5, %v7459_v59, %v5367_v9  ;;  %v2430_v56 = vsel %vm2418_vm5, %v7460_v13, %v2145_v19  ;;  %v1487_v9 = vcombine.high %v4774_v28, %v4774_v28 }
 0x197   : > { %v3893_v10 = vcombine.low %v2427_v35, %v2428_v45  ;;  %v3894_v18 = vcombine.low %v2429_v0, %v2430_v56  ;;  %v3892_v31 = vcombine.low %v3884_v29, %v3891_v1  ;;  %v578_v38 = vmul.f32 %v4774_v28, %v4774_v28  ;;  %4435 = vxpose.xlu1.b32.start [1/16] (narrow) %v3875_v6, 8 }
 0x198   : > { %v5592_v51 = vpop.f32.mrb[4].mxu1  ;;  %v1494_v39 = vrot.slane %v4774_v28, %v5274_v63  ;;  %v557_v15 = vadd.f32 %v5398_v44, %v5394_v40  ;;  %v1501_v16 = vrot.slane %v1487_v9, %v5274_v63  ;;  %v558_v8 = vsel %vm401_vm2, %v5526_v49, 0.0 }
 0x199   : > { %v5600_v14 = vpop.f32.mrb[5].mxu1  ;;  %v3901_v26 = vrot.slane %v3893_v10, %v5297_v27  ;;  %v3908_v11 = vrot.slane %v3894_v18, %v5297_v27  ;;  %v577_v28 = vmul.f32 %v5526_v49, %v5526_v49  ;;  %v587_v58 = vadd.f32 %v5410_v52, %v5419_v57 }
 0x19a   : > { %v1502_v61 = vcombine.high %v1494_v39, %v1494_v39  ;;  %v5614_v19 = vrot.slane %v1494_v39, %v5274_v63  ;;  %v5616_v34 = vadd.f32 %v558_v8, %v557_v15  ;;  %v1503_v44 = vcombine.high %v1501_v16, %v1501_v16 }
 0x19b   : > { %v3909_v40 = vcombine.low %v3901_v26, %v3908_v11  ;;  %v5621_v35 = vrot.slane %v1501_v16, %v5274_v63  ;;  %v5626_v2 = vsel %vm401_vm2, %v578_v38, 0.0  ;;  %v588_v45 = vsel %vm401_vm2, %v577_v28, 0.0  ;;  %4436 = vxpose.xlu1.b32.cont [2/16] (narrow) %v3892_v31, 8 }
 0x19c   : > { %v5629_v47 = vrot.slane %v1502_v61, %v5274_v63  ;;  %v1438_v59 = vcombine.high %v5526_v49, %v5526_v49  ;;  %v5635_v0 = vrot.slane %v1503_v44, %v5274_v63  ;;  %v5639_v1 = vadd.f32 %v588_v45, %v587_v58 }
 0x19d   : > { %v1445_v52 = vrot.slane %v5526_v49, %v5274_v63  ;;  %v1339_v56 = vcombine.high %v5307_v4, %v5307_v4  ;;  %v2153_v10 = vrot.slane %v5356_v62, %v5276_v22  ;;  %v7461_v9 = vcombine.high %v5341_v55, %v5341_v55 }
 0x19e   : > { %v1452_v13 = vrot.slane %v1438_v59, %v5274_v63  ;;  %v7462_v31 = vcombine.high %v5356_v62, %v5356_v62  ;;  %v7463_v11 = vrot.slane %v5341_v55, %v5276_v22  ;;  %v7464_v44 = vcombine.high %v5292_v25, %v5292_v25 }
 0x19f   : > { %v1453_v6 = vcombine.high %v1445_v52, %v1445_v52  ;;  %v5651_v18 = vrot.slane %v1445_v52, %v5274_v63  ;;  %v2157_v49 = vrot.slane %v7461_v9, %v5276_v22  ;;  %v2432_v8 = vsel %vm2418_vm5, %v5307_v4, %v2153_v10  ;;  %4437 = vxpose.xlu1.b32.cont [3/16] (narrow) %v3909_v40, 8 }
 0x1a0   : > { %v2161_v38 = vrot.slane %v7462_v31, %v5276_v22  ;;  %v1454_v15 = vcombine.high %v1452_v13, %v1452_v13  ;;  %v5664_v26 = vrot.slane %v1452_v13, %v5274_v63  ;;  %v2431_v16 = vsel %vm2418_vm5, %v5292_v25, %v7463_v11 }
 0x1a1   : > { %v5678_v28 = vrot.slane %v1453_v6, %v5274_v63  ;;  %v2433_v55 = vsel %vm2418_vm5, %v7464_v44, %v2157_v49  ;;  %v3910_v40 = vcombine.low %v2431_v16, %v2432_v8  ;;  %v826_v13 = vmul.f32 %v5592_v51, %v5592_v51 }
 0x1a2   : > { %v5661_v39 = vpop.f32.mrb[6].mxu0  ;;  %v2434_v58 = vsel %vm2418_vm5, %v1339_v56, %v2161_v38  ;;  %v5686_v45 = vrot.slane %v1454_v15, %v5274_v63  ;;  %v1951_v25 = vcombine.high %v5592_v51, %v5592_v51  ;;  %v1958_v56 = vrot.slane %v5592_v51, %v5274_v63 }
 0x1a3   : > { %v5673_v61 = vpop.f32.mrb[7].mxu0  ;;  %v3911_v59 = vcombine.low %v2433_v55, %v2434_v58  ;;  %v3918_v6 = vrot.slane %v3910_v40, %v5297_v27  ;;  %v805_v49 = vadd.f32 %v5452_v43, %v5448_v41  ;;  %v806_v31 = vsel %vm401_vm2, %v5600_v14, 0.0 }
 0x1a4   : > { %v5710_v15 = vsel %vm401_vm2, %v5592_v51, 0.0  ;;  %v1965_v11 = vrot.slane %v1951_v25, %v5274_v63  ;;  %v1966_v16 = vcombine.high %v1958_v56, %v1958_v56  ;;  %v5714_v8 = vrot.slane %v1958_v56, %v5274_v63 }
 0x1a5   : > { %v3925_v9 = vrot.slane %v3911_v59, %v5297_v27  ;;  %v5716_v55 = vadd.f32 %v806_v31, %v805_v49  ;;  %v825_v41 = vmul.f32 %v5600_v14, %v5600_v14  ;;  %v835_v43 = vadd.f32 %v5472_v50, %v5475_v60 }
 0x1a6   : > { %v5698_v10 = vpop.f32.mrb[8].mxu0  ;;  %v1967_v40 = vcombine.high %v1965_v11, %v1965_v11  ;;  %v5725_v51 = vrot.slane %v1965_v11, %v5274_v63  ;;  %v5728_v59 = vrot.slane %v1966_v16, %v5274_v63  ;;  %v1996_v25 = vcombine.high %v5714_v8, %v5714_v8 }
 0x1a7   : > { %v5706_v38 = vpop.f32.mrb[9].mxu0  ;;  %v3926_v44 = vcombine.low %v3918_v6, %v3925_v9  ;;  %v5737_v9 = vsel %vm401_vm2, %v826_v13, 0.0  ;;  %v836_v50 = vsel %vm401_vm2, %v825_v41, 0.0  ;;  %v1902_v60 = vcombine.high %v5600_v14, %v5600_v14 }
 0x1a8   : > { %v1909_v49 = vrot.slane %v5600_v14, %v5274_v63  ;;  %v5747_v11 = vrot.slane %v1967_v40, %v5274_v63  ;;  %v5758_v57 = vrot.slane %v1996_v25, %v5276_v22  ;;  %v5760_v14 = vadd.f32 %v836_v50, %v835_v43 }
 0x1a9   : > { %v5722_v58 = vpop.f32.mrb[6].mxu1  ;;  %4438 = vxpose.xlu1.b32.cont [4/16] (narrow) %v3926_v44, 8  ;;  %v1916_v40 = vrot.slane %v1902_v60, %v5274_v63  ;;  %v580_v60 = vmul.f32 %v5661_v39, %v5661_v39  ;;  %v1585_v16 = vcombine.high %v5661_v39, %v5661_v39  ;;  %v564_v4 = vsel %vm401_vm2, %v5661_v39, 0.0 }
 0x1aa   : > { %v5732_v56 = vpop.f32.mrb[7].mxu1  ;;  %v5734_v6 = vpop.f32.mrb[10].mxu0  ;;  %v1917_v13 = vcombine.high %v1909_v49, %v1909_v49  ;;  %v5770_v44 = vrot.slane %v1909_v49, %v5274_v63  ;;  %v561_v33 = vadd.f32 %v5603_v17, %v5616_v34  ;;  %v591_v17 = vadd.f32 %v5626_v2, %v5639_v1 }
 0x1ab   : > { %v5744_v31 = vpop.f32.mrb[11].mxu0  ;;  %v1918_v43 = vcombine.high %v1916_v40, %v1916_v40  ;;  %v5777_v50 = vrot.slane %v1916_v40, %v5274_v63  ;;  %v1592_v40 = vrot.slane %v5661_v39, %v5274_v63  ;;  %v594_v49 = vsel %vm401_vm2, %v580_v60, 0.0 }
 0x1ac   : > { %v5786_v29 = vrot.slane %v1917_v13, %v5274_v63  ;;  %v1599_v12 = vrot.slane %v1585_v16, %v5274_v63  ;;  %v562_v13 = vsel %vm401_vm2, %v5673_v61, 0.0  ;;  %v579_v60 = vmul.f32 %v5673_v61, %v5673_v61 }
 0x1ad   : > { %v5763_v62 = vpop.f32.mrb[8].mxu1  ;;  %v5795_v54 = vrot.slane %v1918_v43, %v5274_v63  ;;  %v1600_v46 = vcombine.high %v1592_v40, %v1592_v40  ;;  %v5808_v39 = vrot.slane %v1592_v40, %v5274_v63  ;;  %v563_v37 = vadd.f32 %v562_v13, %v561_v33 }
 0x1ae   : > { %v5772_v41 = vpop.f32.mrb[12].mxu0  ;;  %v5774_v25 = vpop.f32.mrb[9].mxu1  ;;  %v1601_v48 = vcombine.high %v1599_v12, %v1599_v12  ;;  %v5823_v40 = vrot.slane %v1599_v12, %v5274_v63  ;;  %v592_v34 = vsel %vm401_vm2, %v579_v60, 0.0  ;;  %v1536_v30 = vcombine.high %v5673_v61, %v5673_v61 }
 0x1af   : > { %v5783_v52 = vpop.f32.mrb[13].mxu0  ;;  %7465 = vst [vmem:[#allocation20_spill] sm:$0xff] %v5808_v39  ;;  %v5826_v32 = vrot.slane %v1600_v46, %v5274_v63  ;;  %v1543_v12 = vrot.slane %v5673_v61, %v5274_v63  ;;  %v565_v60 = vadd.f32 %v564_v4, %v563_v37  ;;  %v593_v53 = vadd.f32 %v592_v34, %v591_v17 }
 0x1b0   : > { %7466 = vst [vmem:[#allocation21_spill] sm:$0xff] %v5823_v40  ;;  %v5838_v16 = vrot.slane %v1601_v48, %v5274_v63  ;;  %v1550_v48 = vrot.slane %v1536_v30, %v5274_v63  ;;  %v1020_v33 = vmul.f32 %v5698_v10, %v5698_v10  ;;  %v2540_v61 = vcombine.high %v5698_v10, %v5698_v10 }
 0x1b1   : > { %v5803_v21 = vpop.f32.mrb[10].mxu1  ;;  %7467 = vst [vmem:[#allocation22_spill] sm:$0xff] %v5826_v32  ;;  %v5854_v46 = vrot.slane %v1543_v12, %v5274_v63  ;;  %v566_v40 = vrot.slane %v565_v60, 4  ;;  %v595_v39 = vadd.f32 %v594_v49, %v593_v53  ;;  %v998_v4 = vsel %vm401_vm2, %v5698_v10, 0.0 }
 0x1b2   : > { %v5810_v43 = vpop.f32.mrb[11].mxu1  ;;  %7468 = vst [vmem:[#allocation23_spill] sm:$0xff] %v5838_v16  ;;  %v1551_v16 = vcombine.high %v1543_v12, %v1543_v12  ;;  %v1552_v42 = vcombine.high %v1550_v48, %v1550_v48  ;;  %v5861_v5 = vrot.slane %v1550_v48, %v5274_v63  ;;  %v2547_v17 = vrot.slane %v5698_v10, %v5274_v63 }
 0x1b3   : > { %7469 = vst [vmem:[#allocation24_spill] sm:$0xff] %v5854_v46  ;;  %v567_v34 = vadd.f32 %v566_v40, %v565_v60  ;;  %v596_v12 = vrot.slane %v595_v39, 4  ;;  %v1028_v49 = vsel %vm401_vm2, %v1020_v33, 0.0  ;;  %v2554_v48 = vrot.slane %v2540_v61, %v5274_v63 }
 0x1b4   : > { %7470 = vst [vmem:[#allocation25_spill] sm:$0xff] %v5861_v5  ;;  %v5864_v37 = vrot.slane %v1551_v16, %v5274_v63  ;;  %v5873_v53 = vrot.slane %v1552_v42, %v5274_v63  ;;  %v2555_v13 = vcombine.high %v2547_v17, %v2547_v17  ;;  %v5880_v30 = vrot.slane %v2547_v17, %v5274_v63 }
 0x1b5   : > { %v5833_v24 = vpop.f32.mrb[14].mxu0  ;;  %v5835_v36 = vpop.f32.mrb[12].mxu1  ;;  %v568_v46 = vrot.slane %v567_v34, 2  ;;  %v597_v10 = vadd.f32 %v596_v12, %v595_v39  ;;  %v997_v40 = vsel %vm401_vm2, %v5706_v38, 0.0  ;;  %v1019_v42 = vmul.f32 %v5706_v38, %v5706_v38 }
 0x1b6   : > { %v5846_v2 = vpop.f32.mrb[15].mxu0  ;;  %v5848_v1 = vpop.f32.mrb[13].mxu1  ;;  %7471 = vst [vmem:[#allocation26_spill] sm:$0xff] %v5864_v37  ;;  %7472 = vst [vmem:[#allocation27_spill] sm:$0xff] %v5873_v53  ;;  %v2556_v61 = vcombine.high %v2554_v48, %v2554_v48  ;;  %v5893_v16 = vrot.slane %v2554_v48, %v5274_v63  ;;  %v5896_v17 = vrot.slane %v2555_v13, %v5274_v63 }
 0x1b7   : > { %v569_v5 = vadd.f32 %v568_v46, %v567_v34  ;;  %v598_v39 = vrot.slane %v597_v10, 2  ;;  %v5898_v12 = vadd.f32 %v998_v4, %v997_v40  ;;  %v1027_v53 = vsel %vm401_vm2, %v1019_v42, 0.0 }
 0x1b8   : > { %7473 = vst [vmem:[#allocation28_spill] sm:$0xff] %v5893_v16  ;;  %7474 = vst [vmem:[#allocation29_spill] sm:$0xff] %v5896_v17  ;;  %v5902_v20 = vrot.slane %v2556_v61, %v5274_v63  ;;  %v5908_v48 = vadd.f32 %v1028_v49, %v1027_v53  ;;  %v2491_v46 = vcombine.high %v5706_v38, %v5706_v38 }
 0x1b9   : > { %v570_v37 = vrot.slane %v569_v5, 1  ;;  %v599_v13 = vadd.f32 %v598_v39, %v597_v10  ;;  %v2498_v4 = vrot.slane %v5706_v38, %v5274_v63  ;;  %v828_v40 = vmul.f32 %v5722_v58, %v5722_v58 }
 0x1ba   : > { %7475 = vst [vmem:[#allocation30_spill] sm:$0xff] %v5902_v20  ;;  %v2049_v42 = vcombine.high %v5722_v58, %v5722_v58  ;;  %v2056_v53 = vrot.slane %v5722_v58, %v5274_v63  ;;  %v2505_v10 = vrot.slane %v2491_v46, %v5274_v63  ;;  %v812_v39 = vsel %vm401_vm2, %v5722_v58, 0.0 }
 0x1bb   : > { %v600_v49 = vrot.slane %v599_v13, 1  ;;  %v2506_v61 = vcombine.high %v2498_v4, %v2498_v4  ;;  %v5925_v38 = vadd.f32 %v570_v37, %v569_v5  ;;  %v5928_v60 = vrot.slane %v2498_v4, %v5274_v63 }
 0x1bc   : > { %v5882_v32 = vpop.f32.mrb[14].mxu1  ;;  %v2063_v34 = vrot.slane %v2049_v42, %v5274_v63  ;;  %v2064_v7 = vcombine.high %v2056_v53, %v2056_v53  ;;  %v2507_v3 = vcombine.high %v2505_v10, %v2505_v10  ;;  %v5932_v23 = vrot.slane %v2505_v10, %v5274_v63 }
 0x1bd   : > { %v5888_v33 = vpop.f32.mrb[15].mxu1  ;;  %v5935_v16 = vrot.slane %v2506_v61, %v5274_v63  ;;  %v842_v46 = vsel %vm401_vm2, %v828_v40, 0.0  ;;  %v5938_v20 = vadd.f32 %v600_v49, %v599_v13  ;;  %v5941_v5 = vrot.slane %v2056_v53, %v5274_v63 }
 0x1be   : > { %v2065_v58 = vcombine.high %v2063_v34, %v2063_v34  ;;  %v5944_v37 = vrot.slane %v2063_v34, %v5274_v63  ;;  %v5947_v4 = vrot.slane %v2507_v3, %v5274_v63  ;;  %v5954_v40 = vrot.slane %v2064_v7, %v5274_v63 }
 0x1bf   : > { %7476 = vst [vmem:[#allocation31_spill] sm:$0xff] %v5941_v5  ;;  %v2094_v34 = vcombine.high %v5941_v5, %v5941_v5  ;;  %v809_v10 = vadd.f32 %v5710_v15, %v5716_v55  ;;  %v810_v3 = vsel %vm401_vm2, %v5732_v56, 0.0  ;;  %v827_v49 = vmul.f32 %v5732_v56, %v5732_v56 }
 0x1c0   : > { %7477 = vst [vmem:[#allocation32_spill] sm:$0xff] %v5944_v37  ;;  %7478 = vst [vmem:[#allocation33_spill] sm:$0xff] %v5954_v40  ;;  %v5959_v53 = vrot.slane %v2065_v58, %v5274_v63  ;;  %v839_v61 = vadd.f32 %v5737_v9, %v5760_v14  ;;  %v2000_v7 = vcombine.high %v5732_v56, %v5732_v56 }
 0x1c1   : > { %v811_v42 = vadd.f32 %v810_v3, %v809_v10  ;;  %v2007_v15 = vrot.slane %v5732_v56, %v5274_v63  ;;  %v5988_v55 = vrot.slane %v2094_v34, %v5276_v22  ;;  %v840_v13 = vsel %vm401_vm2, %v827_v49, 0.0 }
 0x1c2   : > { %7479 = vst [vmem:[#allocation34_spill] sm:$0xff] %v5959_v53  ;;  %v1022_v58 = vmul.f32 %v5734_v6, %v5734_v6  ;;  %v2638_v10 = vcombine.high %v5734_v6, %v5734_v6  ;;  %v841_v37 = vadd.f32 %v840_v13, %v839_v61  ;;  %v2014_v9 = vrot.slane %v2000_v7, %v5274_v63 }
 0x1c3   : > { %7480 = vst [vmem:[#allocation35_spill] sm:$0xff] %v5988_v55  ;;  %v813_v3 = vadd.f32 %v812_v39, %v811_v42  ;;  %v2015_v14 = vcombine.high %v2007_v15, %v2007_v15  ;;  %v5997_v53 = vrot.slane %v2007_v15, %v5274_v63  ;;  %v6001_v56 = vsel %vm401_vm2, %v5734_v6, 0.0 }
 0x1c4   : > { %v2645_v34 = vrot.slane %v5734_v6, %v5274_v63  ;;  %v2652_v49 = vrot.slane %v2638_v10, %v5274_v63  ;;  %v843_v5 = vadd.f32 %v842_v46, %v841_v37  ;;  %v2016_v40 = vcombine.high %v2014_v9, %v2014_v9 }
 0x1c5   : > { %7481 = vst [vmem:[#allocation36_spill] sm:$0xff] %v5997_v53  ;;  %v814_v55 = vrot.slane %v813_v3, 4  ;;  %v6007_v39 = vrot.slane %v2014_v9, %v5274_v63  ;;  %v6010_v42 = vrot.slane %v2015_v14, %v5274_v63  ;;  %v2045_v13 = vcombine.high %v5997_v53, %v5997_v53 }
 0x1c6   : > { %v6015_v61 = vsel %vm401_vm2, %v1022_v58, 0.0  ;;  %v2653_v7 = vcombine.high %v2645_v34, %v2645_v34  ;;  %v844_v6 = vrot.slane %v843_v5, 4  ;;  %v6018_v10 = vrot.slane %v2016_v40, %v5274_v63 }
 0x1c7   : > { %7482 = vst [vmem:[#allocation37_spill] sm:$0xff] %v6007_v39  ;;  %7483 = vst [vmem:[#allocation38_spill] sm:$0xff] %v6010_v42  ;;  %v815_v15 = vadd.f32 %v814_v55, %v813_v3  ;;  %v6029_v58 = vrot.slane %v2045_v13, %v5276_v22  ;;  %v2654_v17 = vcombine.high %v2652_v49, %v2652_v49 }
 0x1c8   : > { %7484 = vst [vmem:[#allocation39_spill] sm:$0xff] %v6018_v10  ;;  %v845_v3 = vadd.f32 %v844_v6, %v843_v5  ;;  %v6036_v37 = vrot.slane %v2645_v34, %v5274_v63  ;;  %v6039_v9 = vrot.slane %v2652_v49, %v5274_v63  ;;  %v6042_v14 = vrot.slane %v2653_v7, %v5274_v63 }
 0x1c9   : > { %7485 = vst [vmem:[#allocation40_spill] sm:$0xff] %v6029_v58  ;;  %v816_v55 = vrot.slane %v815_v15, 2  ;;  %v1485_v5 = vcombine.high %v5678_v28, %v5678_v28  ;;  %v2233_v6 = vrot.slane %v5786_v29, %v5276_v22  ;;  %v6049_v40 = vrot.slane %v2654_v17, %v5274_v63 }
 0x1ca   : > { %7486 = vst [vmem:[#allocation41_spill] sm:$0xff] %v6036_v37  ;;  %7487 = vst [vmem:[#allocation42_spill] sm:$0xff] %v6039_v9  ;;  %v846_v58 = vrot.slane %v845_v3, 2  ;;  %v7490_v7 = vcombine.high %v5770_v44, %v5770_v44  ;;  %v7491_v39 = vcombine.high %v5786_v29, %v5786_v29  ;;  %v7492_v17 = vrot.slane %v5770_v44, %v5276_v22 }
 0x1cb   : > { %7488 = vst [vmem:[#allocation43_spill] sm:$0xff] %v6042_v14  ;;  %v817_v13 = vadd.f32 %v816_v55, %v815_v15  ;;  %7489 = vst [vmem:[#allocation44_spill] sm:$0xff] %v6049_v40  ;;  %v2452_v49 = vsel %vm2418_vm5, %v5678_v28, %v2233_v6  ;;  %v7493_v9 = vcombine.high %v5651_v18, %v5651_v18  ;;  %v1179_v44 = vsel %vm401_vm2, %v5774_v25, 0.0 }
 0x1cc   : > { %v2237_v15 = vrot.slane %v7490_v7, %v5276_v22  ;;  %v847_v46 = vadd.f32 %v846_v58, %v845_v3  ;;  %v2241_v10 = vrot.slane %v7491_v39, %v5276_v22  ;;  %v2451_v34 = vsel %vm2418_vm5, %v5651_v18, %v7492_v17 }
 0x1cd   : > { %v818_v55 = vrot.slane %v817_v13, 1  ;;  %v1000_v58 = vsel %vm401_vm2, %v5744_v31, 0.0  ;;  %v1021_v29 = vmul.f32 %v5744_v31, %v5744_v31  ;;  %v4131_v17 = vcombine.low %v2451_v34, %v2452_v49 }
 0x1ce   : > { %v2453_v7 = vsel %vm2418_vm5, %v7493_v9, %v2237_v15  ;;  %v848_v39 = vrot.slane %v847_v46, 1  ;;  %v2454_v3 = vsel %vm2418_vm5, %v1485_v5, %v2241_v10  ;;  %v6082_v28 = vadd.f32 %v1000_v58, %v5898_v12 }
 0x1cf   : > { %v4132_v40 = vcombine.low %v2453_v7, %v2454_v3  ;;  %v1030_v18 = vsel %vm401_vm2, %v1021_v29, 0.0  ;;  %v2589_v9 = vcombine.high %v5744_v31, %v5744_v31  ;;  %v6087_v6 = vadd.f32 %v818_v55, %v817_v13 }
 0x1d0   : > { %v6089_v15 = vadd.f32 %v848_v39, %v847_v46  ;;  %v6092_v37 = vadd.f32 %v1030_v18, %v5908_v48  ;;  %v2596_v10 = vrot.slane %v5744_v31, %v5274_v63  ;;  %v4139_v5 = vrot.slane %v4131_v17, %v5297_v27 }
 0x1d1   : > { %v4146_v12 = vrot.slane %v4132_v40, %v5297_v27  ;;  %v2603_v34 = vrot.slane %v2589_v9, %v5274_v63  ;;  %v1202_v49 = vmul.f32 %v5763_v62, %v5763_v62  ;;  %v3004_v48 = vcombine.high %v5763_v62, %v5763_v62 }
 0x1d2   : > { %v2604_v7 = vcombine.high %v2596_v10, %v2596_v10  ;;  %v6102_v13 = vrot.slane %v2596_v10, %v5274_v63  ;;  %v3011_v46 = vrot.slane %v5763_v62, %v5274_v63  ;;  %v1180_v40 = vsel %vm401_vm2, %v5763_v62, 0.0 }
 0x1d3   : > { %v4147_v31 = vcombine.low %v4139_v5, %v4146_v12  ;;  %v2605_v55 = vcombine.high %v2603_v34, %v2603_v34  ;;  %v6109_v58 = vrot.slane %v2603_v34, %v5274_v63  ;;  %v1210_v39 = vsel %vm401_vm2, %v1202_v49, 0.0 }
 0x1d4   : > { %7494 = vst [vmem:[#allocation45_spill] sm:$0xff] %v6102_v13  ;;  %v6114_v29 = vrot.slane %v2604_v7, %v5274_v63  ;;  %v3018_v3 = vrot.slane %v3004_v48, %v5274_v63  ;;  %v3019_v17 = vcombine.high %v3011_v46, %v3011_v46  ;;  %v6126_v62 = vrot.slane %v3011_v46, %v5274_v63 }
 0x1d5   : > { %7495 = vst [vmem:[#allocation46_spill] sm:$0xff] %v6109_v58  ;;  %4467 = vxpose.xlu0.b32.start [1/16] (narrow) %v4147_v31, 8  ;;  %v6119_v18 = vrot.slane %v2605_v55, %v5274_v63  ;;  %v6136_v49 = vsel %vm401_vm2, %v5772_v41, 0.0  ;;  %v1024_v46 = vmul.f32 %v5772_v41, %v5772_v41  ;;  %v2736_v31 = vcombine.high %v5772_v41, %v5772_v41 }
 0x1d6   : > { %7496 = vst [vmem:[#allocation47_spill] sm:$0xff] %v6114_v29  ;;  %v3020_v5 = vcombine.high %v3018_v3, %v3018_v3  ;;  %v6129_v12 = vrot.slane %v3018_v3, %v5274_v63  ;;  %v6132_v34 = vrot.slane %v3019_v17, %v5274_v63  ;;  %v3049_v48 = vcombine.high %v6126_v62, %v6126_v62 }
 0x1d7   : > { %7497 = vst [vmem:[#allocation48_spill] sm:$0xff] %v6119_v18  ;;  %v6165_v3 = vsel %vm401_vm2, %v1024_v46, 0.0  ;;  %v2750_v17 = vrot.slane %v2736_v31, %v5274_v63  ;;  %v1201_v10 = vmul.f32 %v5774_v25, %v5774_v25  ;;  %v6175_v58 = vadd.f32 %v1180_v40, %v1179_v44 }
 0x1d8   : > { %v6147_v55 = vrot.slane %v3020_v5, %v5274_v63  ;;  %v6158_v7 = vrot.slane %v3049_v48, %v5276_v22  ;;  %v2743_v5 = vrot.slane %v5772_v41, %v5274_v63  ;;  %v2955_v41 = vcombine.high %v5774_v25, %v5774_v25 }
 0x1d9   : > { %v2752_v9 = vcombine.high %v2750_v17, %v2750_v17  ;;  %v6180_v46 = vrot.slane %v2750_v17, %v5274_v63  ;;  %v1209_v31 = vsel %vm401_vm2, %v1201_v10, 0.0  ;;  %v2962_v18 = vrot.slane %v5774_v25, %v5274_v63 }
 0x1da   : > { %v2751_v14 = vcombine.high %v2743_v5, %v2743_v5  ;;  %v6173_v48 = vrot.slane %v2743_v5, %v5274_v63  ;;  %v6190_v44 = vadd.f32 %v1210_v39, %v1209_v31  ;;  %v2969_v40 = vrot.slane %v2955_v41, %v5274_v63 }
 0x1db   : > { %7499 = vst [vmem:[#allocation50_spill] sm:$0xff] %v6180_v46  ;;  %v6194_v13 = vrot.slane %v2752_v9, %v5274_v63  ;;  %v2970_v10 = vcombine.high %v2962_v18, %v2962_v18  ;;  %v6199_v53 = vrot.slane %v2962_v18, %v5274_v63  ;;  %v1486_v18 = vcombine.high %v5686_v45, %v5686_v45 }
 0x1dc   : > { %7498 = vst [vmem:[#allocation49_spill] sm:$0xff] %v6173_v48  ;;  %v6188_v5 = vrot.slane %v2751_v14, %v5274_v63  ;;  %v2971_v39 = vcombine.high %v2969_v40, %v2969_v40  ;;  %v6206_v31 = vrot.slane %v2969_v40, %v5274_v63  ;;  %v2249_v17 = vrot.slane %v5795_v54, %v5276_v22 }
 0x1dd   : > { %7501 = vst [vmem:[#allocation52_spill] sm:$0xff] %v6194_v13  ;;  %v6209_v9 = vrot.slane %v2970_v10, %v5274_v63  ;;  %v3000_v41 = vcombine.high %v6199_v53, %v6199_v53  ;;  %v7502_v10 = vcombine.high %v5777_v50, %v5777_v50  ;;  %v7503_v14 = vcombine.high %v5795_v54, %v5795_v54 }
 0x1de   : > { %7500 = vst [vmem:[#allocation51_spill] sm:$0xff] %v6188_v5  ;;  %v6218_v25 = vrot.slane %v2971_v39, %v5274_v63  ;;  %v2456_v46 = vsel %vm2418_vm5, %v5686_v45, %v2249_v17  ;;  %v7505_v39 = vcombine.high %v5664_v26, %v5664_v26  ;;  %v1033_v45 = vadd.f32 %v6015_v61, %v6092_v37 }
 0x1df   : > { %v2253_v29 = vrot.slane %v7502_v10, %v5276_v22  ;;  %v2257_v13 = vrot.slane %v7503_v14, %v5276_v22  ;;  %v6239_v40 = vrot.slane %v3000_v41, %v5276_v22  ;;  %v7504_v10 = vrot.slane %v5777_v50, %v5276_v22 }
 0x1e0   : > { %v1003_v41 = vadd.f32 %v6001_v56, %v6082_v28  ;;  %v1004_v50 = vsel %vm401_vm2, %v5783_v52, 0.0  ;;  %v2694_v56 = vrot.slane %v5783_v52, %v5274_v63  ;;  %v1204_v61 = vmul.f32 %v5803_v21, %v5803_v21 }
 0x1e1   : > { %v2455_v42 = vsel %vm2418_vm5, %v5664_v26, %v7504_v10  ;;  %v2457_v5 = vsel %vm2418_vm5, %v7505_v39, %v2253_v29  ;;  %v2458_v54 = vsel %vm2418_vm5, %v1486_v18, %v2257_v13  ;;  %v1023_v10 = vmul.f32 %v5783_v52, %v5783_v52 }
 0x1e2   : > { %v4148_v14 = vcombine.low %v2455_v42, %v2456_v46  ;;  %v4149_v48 = vcombine.low %v2457_v5, %v2458_v54  ;;  %v2687_v26 = vcombine.high %v5783_v52, %v5783_v52  ;;  %v6266_v29 = vadd.f32 %v1004_v50, %v1003_v41 }
 0x1e3   : > { %v1034_v46 = vsel %vm401_vm2, %v1023_v10, 0.0  ;;  %v2702_v17 = vcombine.high %v2694_v56, %v2694_v56  ;;  %v6278_v18 = vrot.slane %v2694_v56, %v5274_v63  ;;  %v3102_v39 = vcombine.high %v5803_v21, %v5803_v21 }
 0x1e4   : > { %v4156_v42 = vrot.slane %v4148_v14, %v5297_v27  ;;  %v4163_v28 = vrot.slane %v4149_v48, %v5297_v27  ;;  %v2701_v5 = vrot.slane %v2687_v26, %v5274_v63  ;;  %v6275_v37 = vadd.f32 %v1034_v46, %v1033_v45 }
 0x1e5   : > { %v6287_v14 = vsel %vm401_vm2, %v5803_v21, 0.0  ;;  %v6290_v41 = vrot.slane %v2702_v17, %v5274_v63  ;;  %v6293_v50 = vsel %vm401_vm2, %v1204_v61, 0.0  ;;  %v3109_v10 = vrot.slane %v5803_v21, %v5274_v63 }
 0x1e6   : > { %v4164_v54 = vcombine.low %v4156_v42, %v4163_v28  ;;  %v2703_v52 = vcombine.high %v2701_v5, %v2701_v5  ;;  %v6283_v48 = vrot.slane %v2701_v5, %v5274_v63  ;;  %v3116_v45 = vrot.slane %v3102_v39, %v5274_v63 }
 0x1e7   : > { %v1182_v56 = vsel %vm401_vm2, %v5810_v43, 0.0  ;;  %v1203_v28 = vmul.f32 %v5810_v43, %v5810_v43  ;;  %v3117_v5 = vcombine.high %v3109_v10, %v3109_v10  ;;  %v6310_v61 = vrot.slane %v3109_v10, %v5274_v63 }
 0x1e8   : > { %4468 = vxpose.xlu0.b32.cont [2/16] (narrow) %v4164_v54, 8  ;;  %v6299_v26 = vrot.slane %v2703_v52, %v5274_v63  ;;  %v3118_v21 = vcombine.high %v3116_v45, %v3116_v45  ;;  %v6313_v17 = vrot.slane %v3116_v45, %v5274_v63  ;;  %v6316_v39 = vadd.f32 %v1182_v56, %v6175_v58 }
 0x1e9   : > { %7506 = vst [vmem:[#allocation53_spill] sm:$0xff] %v6310_v61  ;;  %v1212_v54 = vsel %vm401_vm2, %v1203_v28, 0.0  ;;  %v3053_v52 = vcombine.high %v5810_v43, %v5810_v43  ;;  %v6324_v46 = vrot.slane %v3117_v5, %v5274_v63  ;;  %v3147_v45 = vcombine.high %v6310_v61, %v6310_v61 }
 0x1ea   : > { %7507 = vst [vmem:[#allocation54_spill] sm:$0xff] %v6313_v17  ;;  %v6327_v10 = vrot.slane %v3118_v21, %v5274_v63  ;;  %v6336_v28 = vadd.f32 %v1212_v54, %v6190_v44  ;;  %v3060_v42 = vrot.slane %v5810_v43, %v5274_v63  ;;  %v7510_v43 = vcombine.high %v5728_v59, %v5728_v59 }
 0x1eb   : > { %7508 = vst [vmem:[#allocation55_spill] sm:$0xff] %v6324_v46  ;;  %v3067_v56 = vrot.slane %v3053_v52, %v5274_v63  ;;  %v6357_v5 = vrot.slane %v3147_v45, %v5276_v22  ;;  %v7512_v21 = vrot.slane %v5714_v8, %v5276_v22  ;;  %v7513_v52 = vrot.slane %v5728_v59, %v5276_v22 }
 0x1ec   : > { %7509 = vst [vmem:[#allocation56_spill] sm:$0xff] %v6327_v10  ;;  %v3068_v61 = vcombine.high %v3060_v42, %v3060_v42  ;;  %v6350_v44 = vrot.slane %v3060_v42, %v5274_v63  ;;  %v2273_v54 = vrot.slane %v7510_v43, %v5276_v22  ;;  %v7514_v13 = vcombine.high %v5614_v19, %v5614_v19 }
 0x1ed   : > { %7511 = vst [vmem:[#allocation57_spill] sm:$0xff] %v6357_v5  ;;  %v2459_v58 = vsel %vm2418_vm5, %v5614_v19, %v7512_v21  ;;  %v2460_v42 = vsel %vm2418_vm5, %v5629_v47, %v7513_v52  ;;  %v3069_v45 = vcombine.high %v3067_v56, %v3067_v56  ;;  %v6375_v17 = vrot.slane %v3067_v56, %v5274_v63 }
 0x1ee   : > { %v2461_v43 = vsel %vm2418_vm5, %v7514_v13, %v5758_v57  ;;  %v6378_v8 = vrot.slane %v3068_v61, %v5274_v63  ;;  %v3098_v21 = vcombine.high %v6350_v44, %v6350_v44  ;;  %v7516_v59 = vcombine.high %v5629_v47, %v5629_v47 }
 0x1ef   : > { %7515 = vst [vmem:[#allocation58_spill] sm:$0xff] %v6375_v17  ;;  %v4165_v10 = vcombine.low %v2459_v58, %v2460_v42  ;;  %v1010_v19 = vsel %vm401_vm2, %v5833_v24, 0.0  ;;  %v1026_v57 = vmul.f32 %v5833_v24, %v5833_v24  ;;  %v6391_v13 = vrot.slane %v3069_v45, %v5274_v63 }
 0x1f0   : > { %v2462_v52 = vsel %vm2418_vm5, %v7516_v59, %v2273_v54  ;;  %v6402_v54 = vrot.slane %v3098_v21, %v5276_v22  ;;  %v2834_v56 = vcombine.high %v5833_v24, %v5833_v24  ;;  %v2841_v47 = vrot.slane %v5833_v24, %v5274_v63 }
 0x1f1   : > { %7517 = vst [vmem:[#allocation59_spill] sm:$0xff] %v6391_v13  ;;  %v4166_v45 = vcombine.low %v2461_v43, %v2462_v52  ;;  %v4173_v61 = vrot.slane %v4165_v10, %v5297_v27  ;;  %v1040_v21 = vsel %vm401_vm2, %v1026_v57, 0.0  ;;  %v1206_v5 = vmul.f32 %v5835_v36, %v5835_v36 }
 0x1f2   : > { %v3200_v43 = vcombine.high %v5835_v36, %v5835_v36  ;;  %v2848_v52 = vrot.slane %v2834_v56, %v5274_v63  ;;  %v2849_v42 = vcombine.high %v2841_v47, %v2841_v47  ;;  %v6421_v10 = vrot.slane %v2841_v47, %v5274_v63 }
 0x1f3   : > { %v4180_v58 = vrot.slane %v4166_v45, %v5297_v27  ;;  %v3207_v59 = vrot.slane %v5835_v36, %v5274_v63  ;;  %v6427_v45 = vsel %vm401_vm2, %v5835_v36, 0.0  ;;  %v6432_v46 = vadd.f32 %v6087_v6, %v5925_v38 }
 0x1f4   : > { %7518 = vst [vmem:[#allocation60_spill] sm:$0xff] %v6421_v10  ;;  %v3214_v57 = vrot.slane %v3200_v43, %v5274_v63  ;;  %v2850_v17 = vcombine.high %v2848_v52, %v2848_v52  ;;  %v6435_v56 = vrot.slane %v2848_v52, %v5274_v63  ;;  %v6438_v47 = vrot.slane %v2849_v42, %v5274_v63 }
 0x1f5   : > { %v4181_v24 = vcombine.low %v4173_v61, %v4180_v58  ;;  %v6441_v13 = vsel %vm401_vm2, %v1206_v5, 0.0  ;;  %v3215_v61 = vcombine.high %v3207_v59, %v3207_v59  ;;  %v6444_v58 = vrot.slane %v3207_v59, %v5274_v63 }
 0x1f6   : > { %7519 = vst [vmem:[#allocation61_spill] sm:$0xff] %v6435_v56  ;;  %7520 = vst [vmem:[#allocation62_spill] sm:$0xff] %v6438_v47  ;;  %v3216_v36 = vcombine.high %v3214_v57, %v3214_v57  ;;  %v6447_v43 = vrot.slane %v3214_v57, %v5274_v63  ;;  %v6450_v38 = vrot.slane %v2850_v17, %v5274_v63  ;;  %v1186_v59 = vsel %vm401_vm2, %v5848_v1, 0.0 }
 0x1f7   : > { %4469 = vxpose.xlu0.b32.cont [3/16] (narrow) %v4181_v24, 8  ;;  %v6458_v5 = vadd.f32 %v6089_v15, %v5938_v20  ;;  %v6463_v52 = vrot.slane %v3215_v61, %v5274_v63  ;;  %v3245_v17 = vcombine.high %v6444_v58, %v6444_v58  ;;  %v1007_v20 = vadd.f32 %v6136_v49, %v6266_v29 }
 0x1f8   : > { %7521 = vst [vmem:[#allocation63_spill] sm:$0xff] %v6450_v38  ;;  %v6466_v24 = vrot.slane %v3216_v36, %v5274_v63  ;;  %v1008_v15 = vsel %vm401_vm2, %v5846_v2, 0.0  ;;  %v1025_v42 = vmul.f32 %v5846_v2, %v5846_v2  ;;  %v1037_v49 = vadd.f32 %v6165_v3, %v6275_v37 }
 0x1f9   : > { %v1009_v57 = vadd.f32 %v1008_v15, %v1007_v20  ;;  %v2785_v29 = vcombine.high %v5846_v2, %v5846_v2  ;;  %v2792_v61 = vrot.slane %v5846_v2, %v5274_v63  ;;  %v1185_v36 = vadd.f32 %v6287_v14, %v6316_v39 }
 0x1fa   : > { %v1205_v20 = vmul.f32 %v5848_v1, %v5848_v1  ;;  %v1038_v6 = vsel %vm401_vm2, %v1025_v42, 0.0  ;;  %v1215_v37 = vadd.f32 %v6293_v50, %v6336_v28  ;;  %v6512_v42 = vrot.slane %v3245_v17, %v5276_v22 }
 0x1fb   : > { %v1011_v15 = vadd.f32 %v1010_v19, %v1009_v57  ;;  %v2799_v3 = vrot.slane %v2785_v29, %v5274_v63  ;;  %v1039_v56 = vadd.f32 %v1038_v6, %v1037_v49  ;;  %v2800_v38 = vcombine.high %v2792_v61, %v2792_v61 }
 0x1fc   : > { %v6505_v2 = vrot.slane %v2792_v61, %v5274_v63  ;;  %v1187_v14 = vadd.f32 %v1186_v59, %v1185_v36  ;;  %v1216_v19 = vsel %vm401_vm2, %v1205_v20, 0.0  ;;  %v3151_v61 = vcombine.high %v5848_v1, %v5848_v1 }
 0x1fd   : > { %v1012_v39 = vrot.slane %v1011_v15, 4  ;;  %v2801_v47 = vcombine.high %v2799_v3, %v2799_v3  ;;  %v6508_v10 = vrot.slane %v2799_v3, %v5274_v63  ;;  %v1041_v57 = vadd.f32 %v1040_v21, %v1039_v56 }
 0x1fe   : > { %v6515_v29 = vrot.slane %v2800_v38, %v5274_v63  ;;  %v1217_v50 = vadd.f32 %v1216_v19, %v1215_v37  ;;  %v3158_v56 = vrot.slane %v5848_v1, %v5274_v63  ;;  %v3165_v49 = vrot.slane %v3151_v61, %v5274_v63 }
 0x1ff   : > { %7522 = vst [vmem:[#allocation64_spill] sm:$0xff] %v6508_v10  ;;  %v1013_v28 = vadd.f32 %v1012_v39, %v1011_v15  ;;  %v6518_v6 = vrot.slane %v2801_v47, %v5274_v63  ;;  %v1042_v36 = vrot.slane %v1041_v57, 4  ;;  %v1535_v20 = vcombine.high %v5635_v0, %v5635_v0 }
 0x200   : > { %v3166_v3 = vcombine.high %v3158_v56, %v3158_v56  ;;  %v6536_v37 = vrot.slane %v3158_v56, %v5274_v63  ;;  %v2281_v39 = vrot.slane %v5747_v11, %v5276_v22  ;;  %v3167_v17 = vcombine.high %v3165_v49, %v3165_v49 }
 0x201   : > { %7523 = vst [vmem:[#allocation65_spill] sm:$0xff] %v6518_v6  ;;  %v1014_v38 = vrot.slane %v1013_v28, 2  ;;  %v1043_v15 = vadd.f32 %v1042_v36, %v1041_v57  ;;  %v6541_v1 = vrot.slane %v3165_v49, %v5274_v63  ;;  %v7524_v61 = vcombine.high %v5725_v51, %v5725_v51 }
 0x202   : > { %v6548_v57 = vrot.slane %v3166_v3, %v5274_v63  ;;  %v3196_v36 = vcombine.high %v6536_v37, %v6536_v37  ;;  %v6557_v49 = vrot.slane %v3167_v17, %v5274_v63  ;;  %v7526_v59 = vrot.slane %v5725_v51, %v5276_v22 }
 0x203   : > { %v1015_v19 = vadd.f32 %v1014_v38, %v1013_v28  ;;  %v2285_v47 = vrot.slane %v7524_v61, %v5276_v22  ;;  %v1044_v21 = vrot.slane %v1043_v15, 2  ;;  %v7525_v28 = vcombine.high %v5747_v11, %v5747_v11 }
 0x204   : > { %v6570_v17 = vrot.slane %v3196_v36, %v5276_v22  ;;  %v2463_v61 = vsel %vm2418_vm5, %v5621_v35, %v7526_v59  ;;  %v7527_v10 = vcombine.high %v5621_v35, %v5621_v35  ;;  %v3199_v51 = vcombine.high %v6557_v49, %v6557_v49 }
 0x205   : > { %v2289_v56 = vrot.slane %v7525_v28, %v5276_v22  ;;  %v1016_v38 = vrot.slane %v1015_v19, 1  ;;  %v1045_v3 = vadd.f32 %v1044_v21, %v1043_v15  ;;  %v2464_v21 = vsel %vm2418_vm5, %v5635_v0, %v2281_v39 }
 0x206   : > { %v2465_v6 = vsel %vm2418_vm5, %v7527_v10, %v2285_v47  ;;  %v1192_v59 = vsel %vm401_vm2, %v5882_v32, 0.0  ;;  %v1208_v39 = vmul.f32 %v5882_v32, %v5882_v32  ;;  %v3298_v35 = vcombine.high %v5882_v32, %v5882_v32 }
 0x207   : > { %v1017_v28 = vadd.f32 %v1016_v38, %v1015_v19  ;;  %v1046_v15 = vrot.slane %v1045_v3, 1  ;;  %v2466_v19 = vsel %vm2418_vm5, %v1535_v20, %v2289_v56  ;;  %v4182_v38 = vcombine.low %v2463_v61, %v2464_v21 }
 0x208   : > { %v4183_v11 = vcombine.low %v2465_v6, %v2466_v19  ;;  %v3305_v10 = vrot.slane %v5882_v32, %v5274_v63  ;;  %v1189_v20 = vadd.f32 %v6427_v45, %v1187_v14  ;;  %v1190_v6 = vsel %vm401_vm2, %v5888_v33, 0.0 }
 0x209   : > { %v6585_v36 = vadd.f32 %v1017_v28, %v6432_v46  ;;  %v1047_v0 = vadd.f32 %v1046_v15, %v1045_v3  ;;  %v4190_v46 = vrot.slane %v4182_v38, %v5297_v27  ;;  %v3312_v61 = vrot.slane %v3298_v35, %v5274_v63 }
 0x20a   : > { %v4197_v47 = vrot.slane %v4183_v11, %v5297_v27  ;;  %v3313_v3 = vcombine.high %v3305_v10, %v3305_v10  ;;  %v6607_v28 = vrot.slane %v3305_v10, %v5274_v63  ;;  %v1191_v32 = vadd.f32 %v1190_v6, %v1189_v20 }
 0x20b   : > { %v6603_v56 = vadd.f32 %v1047_v0, %v6458_v5  ;;  %v1207_v15 = vmul.f32 %v5888_v33, %v5888_v33  ;;  %v1219_v11 = vadd.f32 %v6441_v13, %v1217_v50  ;;  %v3314_v45 = vcombine.high %v3312_v61, %v3312_v61 }
 0x20c   : > { %v4198_v21 = vcombine.low %v4190_v46, %v4197_v47  ;;  %v6613_v14 = vrot.slane %v3312_v61, %v5274_v63  ;;  %v6616_v5 = vrot.slane %v3313_v3, %v5274_v63  ;;  %v3343_v19 = vcombine.high %v6607_v28, %v6607_v28 }
 0x20d   : > { %v1222_v38 = vsel %vm401_vm2, %v1208_v39, 0.0  ;;  %v1193_v35 = vadd.f32 %v1192_v59, %v1191_v32  ;;  %v1220_v13 = vsel %vm401_vm2, %v1207_v15, 0.0  ;;  %v6625_v50 = vrot.slane %v3314_v45, %v5274_v63 }
 0x20e   : > { %4470 = vxpose.xlu0.b32.cont [4/16] (narrow) %v4198_v21, 8  ;;  %v6634_v39 = vrot.slane %v3343_v19, %v5276_v22  ;;  %v1221_v6 = vadd.f32 %v1220_v13, %v1219_v11  ;;  %v3249_v3 = vcombine.high %v5888_v33, %v5888_v33  ;;  %v3256_v21 = vrot.slane %v5888_v33, %v5274_v63 }
 0x20f   : > { %v1194_v20 = vrot.slane %v1193_v35, 4  ;;  %v7528_v32 = vcombine.high %v6209_v9, %v6209_v9  ;;  %v7529_v11 = vrot.slane %v6199_v53, %v5276_v22  ;;  %v7530_v59 = vrot.slane %v6209_v9, %v5276_v22 }
 0x210   : > { %v1223_v19 = vadd.f32 %v1222_v38, %v1221_v6  ;;  %v3263_v61 = vrot.slane %v3249_v3, %v5274_v63  ;;  %v3264_v10 = vcombine.high %v3256_v21, %v3256_v21  ;;  %v7531_v53 = vcombine.high %v5928_v60, %v5928_v60 }
 0x211   : > { %v3362_v15 = vrot.slane %v7528_v32, %v5276_v22  ;;  %v1195_v45 = vadd.f32 %v1194_v20, %v1193_v35  ;;  %v3667_v13 = vsel %vm2418_vm5, %v5928_v60, %v7529_v11  ;;  %v3668_v33 = vsel %vm2418_vm5, %v5935_v16, %v7530_v59 }
 0x212   : > { %v6661_v32 = vrot.slane %v3256_v21, %v5274_v63  ;;  %v3669_v38 = vsel %vm2418_vm5, %v7531_v53, %v6239_v40  ;;  %v1224_v9 = vrot.slane %v1223_v19, 4  ;;  %v7532_v59 = vcombine.high %v5935_v16, %v5935_v16 }
 0x213   : > { %v1196_v35 = vrot.slane %v1195_v45, 2  ;;  %v3927_v6 = vcombine.low %v3667_v13, %v3668_v33  ;;  %v3265_v3 = vcombine.high %v3263_v61, %v3263_v61  ;;  %v6677_v21 = vrot.slane %v3263_v61, %v5274_v63 }
 0x214   : > { %v3670_v20 = vsel %vm2418_vm5, %v7532_v59, %v3362_v15  ;;  %v6680_v11 = vrot.slane %v3264_v10, %v5274_v63  ;;  %v3294_v60 = vcombine.high %v6661_v32, %v6661_v32  ;;  %v1225_v53 = vadd.f32 %v1224_v9, %v1223_v19 }
 0x215   : > { %v1197_v40 = vadd.f32 %v1196_v35, %v1195_v45  ;;  %v3542_v47 = vrot.slane %v6661_v32, %v5276_v22  ;;  %v3928_v16 = vcombine.low %v3669_v38, %v3670_v20  ;;  %v6687_v15 = vrot.slane %v3265_v3, %v5274_v63 }
 0x216   : > { %v3295_v13 = vcombine.high %v6677_v21, %v6677_v21  ;;  %v3296_v61 = vcombine.high %v6680_v11, %v6680_v11  ;;  %v3546_v10 = vrot.slane %v6680_v11, %v5276_v22  ;;  %v1226_v19 = vrot.slane %v1225_v53, 2 }
 0x217   : > { %v1198_v45 = vrot.slane %v1197_v40, 1  ;;  %v6698_v33 = vrot.slane %v3294_v60, %v5276_v22  ;;  %v3935_v60 = vrot.slane %v3927_v6, %v5297_v27  ;;  %v3942_v0 = vrot.slane %v3928_v16, %v5297_v27 }
 0x218   : > { %v6705_v35 = vrot.slane %v3296_v61, %v5276_v22  ;;  %v6710_v59 = vrot.slane %v3295_v13, %v5276_v22  ;;  %v1227_v3 = vadd.f32 %v1226_v19, %v1225_v53  ;;  %v2539_v61 = vcombine.high %v5947_v4, %v5947_v4 }
 0x219   : > { %v1199_v20 = vadd.f32 %v1198_v45, %v1197_v40  ;;  %v3370_v46 = vrot.slane %v6218_v25, %v5276_v22  ;;  %v7533_v13 = vcombine.high %v6206_v31, %v6206_v31  ;;  %v7534_v6 = vcombine.high %v6218_v25, %v6218_v25 }
 0x21a   : > { %v1228_v45 = vrot.slane %v1227_v3, 1  ;;  %v3943_v19 = vcombine.low %v3935_v60, %v3942_v0  ;;  %v7535_v9 = vrot.slane %v6206_v31, %v5276_v22  ;;  %v7540_v60 = vld [vmem:[#allocation29_spill] sm:$0xff]  ;;  %v7668_v32 = vcombine.high %v6515_v29, %v6515_v29 }
 0x21b   : > { %v3374_v40 = vrot.slane %v7533_v13, %v5276_v22  ;;  %v3378_v53 = vrot.slane %v7534_v6, %v5276_v22  ;;  %v1200_v16 = vadd.f32 %v1199_v20, %v6585_v36  ;;  %v3672_v38 = vsel %vm2418_vm5, %v5947_v4, %v3370_v46 }
 0x21c   : > { %v3671_v63 = vsel %vm2418_vm5, %v5932_v23, %v7535_v9  ;;  %v7536_v13 = vcombine.high %v5932_v23, %v5932_v23  ;;  %v7537_v36 = vcombine.high %v6132_v34, %v6132_v34  ;;  %v1229_v20 = vadd.f32 %v1228_v45, %v1227_v3  ;;  %4439 = vxpose.xlu1.b32.cont [5/16] (narrow) %v3943_v19, 8 }
 0x21d   : > { %v3674_v6 = vsel %vm2418_vm5, %v2539_v61, %v3378_v53  ;;  %1232 = vst.msk [vmem:[%s250_s7] sm:$0x1] %vm1231_vm6, %v1200_v16  ;;  %v3944_v31 = vcombine.low %v3671_v63, %v3672_v38  ;;  %v7538_v4 = vrot.slane %v6126_v62, %v5276_v22  ;;  %v7539_v46 = vrot.slane %v6132_v34, %v5276_v22 }
 0x21e   : > { %v3673_v25 = vsel %vm2418_vm5, %v7536_v13, %v3374_v40  ;;  %v3394_v0 = vrot.slane %v7537_v36, %v5276_v22  ;;  %v7541_v63 = vcombine.high %v5880_v30, %v5880_v30  ;;  %v7542_v62 = vcombine.high %v7540_v60, %v7540_v60 }
 0x21f   : > { %v3945_v9 = vcombine.low %v3673_v25, %v3674_v6  ;;  %v3675_v23 = vsel %vm2418_vm5, %v5880_v30, %v7538_v4  ;;  %v3676_v3 = vsel %vm2418_vm5, %v7540_v60, %v7539_v46  ;;  %v7543_v40 = vcombine.high %v6548_v57, %v6548_v57 }
 0x220   : > { %v3677_v38 = vsel %vm2418_vm5, %v7541_v63, %v6158_v7  ;;  %v3678_v61 = vsel %vm2418_vm5, %v7542_v62, %v3394_v0  ;;  %v1230_v34 = vadd.f32 %v1229_v20, %v6603_v56  ;;  %v3952_v16 = vrot.slane %v3944_v31, %v5297_v27  ;;  %v7552_v62 = vld [vmem:[#allocation28_spill] sm:$0xff] }
 0x221   : > { %v3490_v53 = vrot.slane %v7543_v40, %v5276_v22  ;;  %v3959_v45 = vrot.slane %v3945_v9, %v5297_v27  ;;  %v3961_v19 = vcombine.low %v3675_v23, %v3676_v3  ;;  %v3962_v30 = vcombine.low %v3677_v38, %v3678_v61  ;;  %v7548_v23 = vld [vmem:[#allocation30_spill] sm:$0xff] }
 0x222   : > { %v7544_v7 = vrot.slane %v6536_v37, %v5276_v22  ;;  %v7545_v25 = vrot.slane %v6548_v57, %v5276_v22  ;;  %v7546_v56 = vcombine.high %v6278_v18, %v6278_v18  ;;  %1233 = vst.msk [vmem:[%s257_s10] sm:$0x1] %vm1231_vm6, %v1230_v34  ;;  %v7547_v20 = vcombine.high %v6290_v41, %v6290_v41 }
 0x223   : > { %v3960_v0 = vcombine.low %v3952_v16, %v3959_v45  ;;  %v3969_v37 = vrot.slane %v3961_v19, %v5297_v27  ;;  %v3976_v9 = vrot.slane %v3962_v30, %v5297_v27  ;;  %v2588_v46 = vcombine.high %v7548_v23, %v7548_v23 }
 0x224   : > { %v3699_v13 = vsel %vm2418_vm5, %v6278_v18, %v7544_v7  ;;  %v3700_v6 = vsel %vm2418_vm5, %v6290_v41, %v7545_v25  ;;  %v3701_v36 = vsel %vm2418_vm5, %v7546_v56, %v6570_v17  ;;  %v3702_v31 = vsel %vm2418_vm5, %v7547_v20, %v3490_v53 }
 0x225   : > { %v4199_v57 = vcombine.low %v3699_v13, %v3700_v6  ;;  %v4200_v4 = vcombine.low %v3701_v36, %v3702_v31  ;;  %v3402_v18 = vrot.slane %v6147_v55, %v5276_v22  ;;  %4440 = vxpose.xlu1.b32.cont [6/16] (narrow) %v3960_v0, 8  ;;  %v7549_v60 = vcombine.high %v6129_v12, %v6129_v12  ;;  %v7556_v31 = vld [vmem:[#allocation17_spill] sm:$0xff] }
 0x226   : > { %v7550_v3 = vcombine.high %v6147_v55, %v6147_v55  ;;  %v7551_v38 = vrot.slane %v6129_v12, %v5276_v22  ;;  %v3977_v40 = vcombine.low %v3969_v37, %v3976_v9  ;;  %v2735_v16 = vcombine.high %v6299_v26, %v6299_v26 }
 0x227   : > { %v4207_v17 = vrot.slane %v4199_v57, %v5297_v27  ;;  %v3406_v41 = vrot.slane %v7549_v60, %v5276_v22  ;;  %v4214_v53 = vrot.slane %v4200_v4, %v5297_v27  ;;  %v3680_v34 = vsel %vm2418_vm5, %v7548_v23, %v3402_v18  ;;  %v7559_v18 = vld [vmem:[#allocation11_spill] sm:$0xff] }
 0x228   : > { %v3410_v63 = vrot.slane %v7550_v3, %v5276_v22  ;;  %v3679_v61 = vsel %vm2418_vm5, %v7552_v62, %v7551_v38  ;;  %v7553_v45 = vcombine.high %v7552_v62, %v7552_v62  ;;  %v3498_v30 = vrot.slane %v6557_v49, %v5276_v22  ;;  %v7563_v3 = vld [vmem:[#allocation7_spill] sm:$0xff] }
 0x229   : > { %v3978_v12 = vcombine.low %v3679_v61, %v3680_v34  ;;  %v4215_v7 = vcombine.low %v4207_v17, %v4214_v53  ;;  %v7554_v25 = vcombine.high %v6541_v1, %v6541_v1  ;;  %v3506_v56 = vrot.slane %v3199_v51, %v5276_v22  ;;  %4441 = vxpose.xlu1.b32.cont [7/16] (narrow) %v3977_v40, 8  ;;  %v7561_v17 = vld [vmem:[#allocation3_spill] sm:$0xff] }
 0x22a   : > { %v3681_v55 = vsel %vm2418_vm5, %v7553_v45, %v3406_v41  ;;  %v3682_v19 = vsel %vm2418_vm5, %v2588_v46, %v3410_v63  ;;  %v7555_v0 = vrot.slane %v6541_v1, %v5276_v22  ;;  %v3704_v20 = vsel %vm2418_vm5, %v6299_v26, %v3498_v30  ;;  %v7564_v38 = vld [vmem:[#allocation19_spill] sm:$0xff] }
 0x22b   : > { %v3979_v13 = vcombine.low %v3681_v55, %v3682_v19  ;;  %v3502_v6 = vrot.slane %v7554_v25, %v5276_v22  ;;  %v3986_v36 = vrot.slane %v3978_v12, %v5297_v27  ;;  %v7557_v57 = vcombine.high %v7556_v31, %v7556_v31  ;;  %4471 = vxpose.xlu0.b32.cont [5/16] (narrow) %v4215_v7, 8  ;;  %v7569_v7 = vld [vmem:[#allocation49_spill] sm:$0xff] }
 0x22c   : > { %v3703_v37 = vsel %vm2418_vm5, %v6283_v48, %v7555_v0  ;;  %v7558_v51 = vcombine.high %v6283_v48, %v6283_v48  ;;  %v3706_v1 = vsel %vm2418_vm5, %v2735_v16, %v3506_v56  ;;  %v7560_v26 = vrot.slane %v7559_v18, %v5276_v22  ;;  %v7571_v56 = vld [vmem:[#allocation51_spill] sm:$0xff] }
 0x22d   : > { %v2177_v9 = vrot.slane %v7557_v57, %v5276_v22  ;;  %v3993_v49 = vrot.slane %v3979_v13, %v5297_v27  ;;  %v4216_v23 = vcombine.low %v3703_v37, %v3704_v20  ;;  %v7562_v41 = vrot.slane %v7556_v31, %v5276_v22  ;;  %v7573_v20 = vld [vmem:[#allocation9_spill] sm:$0xff] }
 0x22e   : > { %v3705_v4 = vsel %vm2418_vm5, %v7558_v51, %v3502_v6  ;;  %v2435_v60 = vsel %vm2418_vm5, %v7561_v17, %v7560_v26  ;;  %v7565_v48 = vcombine.high %v7561_v17, %v7561_v17  ;;  %v7566_v53 = vcombine.high %v7563_v3, %v7563_v3 }
 0x22f   : > { %v4217_v46 = vcombine.low %v3705_v4, %v3706_v1  ;;  %v2436_v63 = vsel %vm2418_vm5, %v7563_v3, %v7562_v41  ;;  %v3994_v61 = vcombine.low %v3986_v36, %v3993_v49  ;;  %v4224_v40 = vrot.slane %v4216_v23, %v5297_v27  ;;  %v7575_v4 = vld [vmem:[#allocation18_spill] sm:$0xff] }
 0x230   : > { %v2437_v62 = vsel %vm2418_vm5, %v7565_v48, %v7564_v38  ;;  %v2438_v34 = vsel %vm2418_vm5, %v7566_v53, %v2177_v9  ;;  %v3995_v16 = vcombine.low %v2435_v60, %v2436_v63  ;;  %v7567_v19 = vcombine.high %v6463_v52, %v6463_v52  ;;  %v7576_v23 = vld [vmem:[#allocation14_spill] sm:$0xff]  ;;  %v7581_v38 = vld [vmem:[#allocation52_spill] sm:$0xff] }
 0x231   : > { %v4231_v45 = vrot.slane %v4217_v46, %v5297_v27  ;;  %v3996_v55 = vcombine.low %v2437_v62, %v2438_v34  ;;  %v7568_v30 = vrot.slane %v6444_v58, %v5276_v22  ;;  %4442 = vxpose.xlu1.b32.cont [8/16] (narrow) %v3994_v61, 8  ;;  %v7570_v6 = vrot.slane %v6463_v52, %v5276_v22  ;;  %v7580_v3 = vld [vmem:[#allocation6_spill] sm:$0xff] }
 0x232   : > { %v3522_v12 = vrot.slane %v7567_v19, %v5276_v22  ;;  %v4003_v25 = vrot.slane %v3995_v16, %v5297_v27  ;;  %v7572_v0 = vcombine.high %v7569_v7, %v7569_v7  ;;  %v1388_v58 = vcombine.high %v7573_v20, %v7573_v20 }
 0x233   : > { %v3707_v13 = vsel %vm2418_vm5, %v7569_v7, %v7568_v30  ;;  %v3708_v36 = vsel %vm2418_vm5, %v7571_v56, %v7570_v6  ;;  %v4232_v31 = vcombine.low %v4224_v40, %v4231_v45  ;;  %v4010_v57 = vrot.slane %v3996_v55, %v5297_v27  ;;  %v7586_v6 = vld [vmem:[#allocation50_spill] sm:$0xff] }
 0x234   : > { %v3709_v37 = vsel %vm2418_vm5, %v7572_v0, %v6512_v42  ;;  %v7574_v9 = vcombine.high %v7571_v56, %v7571_v56  ;;  %v4233_v49 = vcombine.low %v3707_v13, %v3708_v36  ;;  %v2185_v1 = vrot.slane %v7575_v4, %v5276_v22  ;;  %v7587_v36 = vld [vmem:[#allocation13_spill] sm:$0xff] }
 0x235   : > { %v7577_v42 = vcombine.high %v7576_v23, %v7576_v23  ;;  %v7578_v18 = vcombine.high %v7575_v4, %v7575_v4  ;;  %4472 = vxpose.xlu0.b32.cont [6/16] (narrow) %v4232_v31, 8  ;;  %v4011_v17 = vcombine.low %v4003_v25, %v4010_v57  ;;  %v7579_v41 = vrot.slane %v7576_v23, %v5276_v22  ;;  %v7594_v23 = vld [vmem:[#allocation5_spill] sm:$0xff] }
 0x236   : > { %v3710_v52 = vsel %vm2418_vm5, %v7574_v9, %v3522_v12  ;;  %v4241_v60 = vrot.slane %v4233_v49, %v5297_v27  ;;  %v2784_v48 = vcombine.high %v7581_v38, %v7581_v38  ;;  %v2440_v61 = vsel %vm2418_vm5, %v7573_v20, %v2185_v1 }
 0x237   : > { %v4234_v51 = vcombine.low %v3709_v37, %v3710_v52  ;;  %v2189_v46 = vrot.slane %v7577_v42, %v5276_v22  ;;  %v2193_v26 = vrot.slane %v7578_v18, %v5276_v22  ;;  %v2439_v63 = vsel %vm2418_vm5, %v7580_v3, %v7579_v41  ;;  %4443 = vxpose.xlu1.b32.cont [9/16] (narrow) %v4011_v17, 8  ;;  %v7590_v52 = vld [vmem:[#allocation10_spill] sm:$0xff] }
 0x238   : > { %v7582_v40 = vcombine.high %v7580_v3, %v7580_v3  ;;  %v4012_v16 = vcombine.low %v2439_v63, %v2440_v61  ;;  %v3530_v55 = vrot.slane %v6466_v24, %v5276_v22  ;;  %v7583_v19 = vcombine.high %v6447_v43, %v6447_v43 }
 0x239   : > { %v4248_v62 = vrot.slane %v4234_v51, %v5297_v27  ;;  %v2442_v34 = vsel %vm2418_vm5, %v1388_v58, %v2193_v26  ;;  %v7584_v7 = vcombine.high %v6466_v24, %v6466_v24  ;;  %v7585_v25 = vrot.slane %v6447_v43, %v5276_v22  ;;  %v7592_v51 = vld [vmem:[#allocation2_spill] sm:$0xff]  ;;  %v7595_v26 = vld [vmem:[#allocation16_spill] sm:$0xff] }
 0x23a   : > { %v2441_v53 = vsel %vm2418_vm5, %v7582_v40, %v2189_v46  ;;  %v3534_v12 = vrot.slane %v7583_v19, %v5276_v22  ;;  %v7588_v0 = vcombine.high %v7587_v36, %v7587_v36  ;;  %v4020_v20 = vrot.slane %v4012_v16, %v5297_v27 }
 0x23b   : > { %v4013_v45 = vcombine.low %v2441_v53, %v2442_v34  ;;  %v4249_v30 = vcombine.low %v4241_v60, %v4248_v62  ;;  %v3538_v13 = vrot.slane %v7584_v7, %v5276_v22  ;;  %v3711_v56 = vsel %vm2418_vm5, %v7586_v6, %v7585_v25  ;;  %v7598_v62 = vld [vmem:[#allocation38_spill] sm:$0xff]  ;;  %v7600_v34 = vld [vmem:[#allocation36_spill] sm:$0xff] }
 0x23c   : > { %v2209_v37 = vrot.slane %v7588_v0, %v5276_v22  ;;  %v3712_v31 = vsel %vm2418_vm5, %v7581_v38, %v3530_v55  ;;  %v7589_v24 = vcombine.high %v7586_v6, %v7586_v6  ;;  %v7591_v49 = vrot.slane %v7590_v52, %v5276_v22  ;;  %v7605_v7 = vld [vmem:[#allocation40_spill] sm:$0xff] }
 0x23d   : > { %v4027_v58 = vrot.slane %v4013_v45, %v5297_v27  ;;  %4473 = vxpose.xlu0.b32.cont [7/16] (narrow) %v4249_v30, 8  ;;  %v3714_v57 = vsel %vm2418_vm5, %v2784_v48, %v3538_v13  ;;  %v4250_v9 = vcombine.low %v3711_v56, %v3712_v31  ;;  %v7593_v1 = vrot.slane %v7587_v36, %v5276_v22  ;;  %v7602_v45 = vld [vmem:[#allocation24_spill] sm:$0xff] }
 0x23e   : > { %v3713_v43 = vsel %vm2418_vm5, %v7589_v24, %v3534_v12  ;;  %v2443_v4 = vsel %vm2418_vm5, %v7592_v51, %v7591_v49  ;;  %v7596_v17 = vcombine.high %v7592_v51, %v7592_v51  ;;  %v7597_v41 = vcombine.high %v7594_v23, %v7594_v23  ;;  %v7604_v12 = vld [vmem:[#allocation26_spill] sm:$0xff]  ;;  %v7608_v31 = vld [vmem:[#allocation8_spill] sm:$0xff] }
 0x23f   : > { %v2444_v42 = vsel %vm2418_vm5, %v7594_v23, %v7593_v1  ;;  %v4028_v46 = vcombine.low %v4020_v20, %v4027_v58  ;;  %v4251_v18 = vcombine.low %v3713_v43, %v3714_v57  ;;  %v4258_v63 = vrot.slane %v4250_v9, %v5297_v27  ;;  %v7609_v43 = vld [vmem:[#allocation15_spill] sm:$0xff]  ;;  %v7610_v49 = vld [vmem:[#allocation12_spill] sm:$0xff] }
 0x240   : > { %v2445_v60 = vsel %vm2418_vm5, %v7596_v17, %v7595_v26  ;;  %v2446_v3 = vsel %vm2418_vm5, %v7597_v41, %v2209_v37  ;;  %v4029_v38 = vcombine.low %v2443_v4, %v2444_v42  ;;  %v7599_v61 = vcombine.high %v7598_v62, %v7598_v62 }
 0x241   : > { %v4030_v48 = vcombine.low %v2445_v60, %v2446_v3  ;;  %4444 = vxpose.xlu1.b32.cont [10/16] (narrow) %v4028_v46, 8  ;;  %v4265_v53 = vrot.slane %v4251_v18, %v5297_v27  ;;  %v7601_v16 = vrot.slane %v7600_v34, %v5276_v22  ;;  %v7603_v19 = vrot.slane %v7598_v62, %v5276_v22  ;;  %v7614_v18 = vld [vmem:[#allocation4_spill] sm:$0xff]  ;;  %v7615_v60 = vld [vmem:[#allocation27_spill] sm:$0xff]  ;;  %v7618_v34 = vld [vmem:[#allocation37_spill] sm:$0xff] }
 0x242   : > { %v2305_v40 = vrot.slane %v7599_v61, %v5276_v22  ;;  %v7606_v13 = vcombine.high %v7602_v45, %v7602_v45  ;;  %v4037_v6 = vrot.slane %v4029_v38, %v5297_v27  ;;  %v7607_v36 = vcombine.high %v7604_v12, %v7604_v12  ;;  %v7617_v62 = vld [vmem:[#allocation39_spill] sm:$0xff] }
 0x243   : > { %v2467_v55 = vsel %vm2418_vm5, %v7602_v45, %v7601_v16  ;;  %v2468_v30 = vsel %vm2418_vm5, %v7604_v12, %v7603_v19  ;;  %v4044_v56 = vrot.slane %v4030_v48, %v5297_v27  ;;  %v4266_v20 = vcombine.low %v4258_v63, %v4265_v53 }
 0x244   : > { %v2469_v25 = vsel %vm2418_vm5, %v7606_v13, %v7605_v7  ;;  %v2470_v0 = vsel %vm2418_vm5, %v7607_v36, %v2305_v40  ;;  %v4267_v37 = vcombine.low %v2467_v55, %v2468_v30  ;;  %v1437_v24 = vcombine.high %v7608_v31, %v7608_v31  ;;  %v7622_v7 = vld [vmem:[#allocation25_spill] sm:$0xff] }
 0x245   : > { %v4268_v58 = vcombine.low %v2469_v25, %v2470_v0  ;;  %v2217_v57 = vrot.slane %v7609_v43, %v5276_v22  ;;  %v4045_v9 = vcombine.low %v4037_v6, %v4044_v56  ;;  %v7611_v51 = vcombine.high %v7610_v49, %v7610_v49  ;;  %4474 = vxpose.xlu0.b32.cont [8/16] (narrow) %v4266_v20, 8 }
 0x246   : > { %v4275_v52 = vrot.slane %v4267_v37, %v5297_v27  ;;  %v7612_v1 = vcombine.high %v7609_v43, %v7609_v43  ;;  %v7613_v46 = vrot.slane %v7610_v49, %v5276_v22  ;;  %v1584_v41 = vcombine.high %v7615_v60, %v7615_v60  ;;  %v7626_v43 = vld [vmem:[#allocation45_spill] sm:$0xff] }
 0x247   : > { %v2221_v4 = vrot.slane %v7611_v51, %v5276_v22  ;;  %v4282_v42 = vrot.slane %v4268_v58, %v5297_v27  ;;  %v2448_v17 = vsel %vm2418_vm5, %v7608_v31, %v2217_v57  ;;  %4445 = vxpose.xlu1.b32.cont [11/16] (narrow) %v4045_v9, 8  ;;  %v7616_v3 = vcombine.high %v7614_v18, %v7614_v18 }
 0x248   : > { %v2225_v23 = vrot.slane %v7612_v1, %v5276_v22  ;;  %v2447_v26 = vsel %vm2418_vm5, %v7614_v18, %v7613_v46  ;;  %v2313_v61 = vrot.slane %v7617_v62, %v5276_v22  ;;  %v7619_v16 = vcombine.high %v7618_v34, %v7618_v34 }
 0x249   : > { %v2449_v63 = vsel %vm2418_vm5, %v7616_v3, %v2221_v4  ;;  %v4046_v48 = vcombine.low %v2447_v26, %v2448_v17  ;;  %v4283_v40 = vcombine.low %v4275_v52, %v4282_v42  ;;  %v7620_v55 = vcombine.high %v7617_v62, %v7617_v62  ;;  %v7628_v52 = vld [vmem:[#allocation47_spill] sm:$0xff]  ;;  %v7631_v26 = vld [vmem:[#allocation33_spill] sm:$0xff]  ;;  %v7635_v3 = vld [vmem:[#allocation20_spill] sm:$0xff] }
 0x24a   : > { %v2450_v38 = vsel %vm2418_vm5, %v1437_v24, %v2225_v23  ;;  %v2317_v45 = vrot.slane %v7619_v16, %v5276_v22  ;;  %v7621_v30 = vrot.slane %v7618_v34, %v5276_v22  ;;  %v2472_v25 = vsel %vm2418_vm5, %v7615_v60, %v2313_v61  ;;  %v7637_v62 = vld [vmem:[#allocation22_spill] sm:$0xff]  ;;  %v7640_v16 = vld [vmem:[#allocation48_spill] sm:$0xff] }
 0x24b   : > { %v4047_v53 = vcombine.low %v2449_v63, %v2450_v38  ;;  %v2321_v19 = vrot.slane %v7620_v55, %v5276_v22  ;;  %v4054_v12 = vrot.slane %v4046_v48, %v5297_v27  ;;  %v7623_v6 = vcombine.high %v6378_v8, %v6378_v8  ;;  %4475 = vxpose.xlu0.b32.cont [9/16] (narrow) %v4283_v40, 8  ;;  %v7638_v40 = vld [vmem:[#allocation35_spill] sm:$0xff] }
 0x24c   : > { %v2471_v13 = vsel %vm2418_vm5, %v7622_v7, %v7621_v30  ;;  %v7624_v0 = vcombine.high %v7622_v7, %v7622_v7  ;;  %v7625_v24 = vrot.slane %v6350_v44, %v5276_v22  ;;  %v7627_v9 = vrot.slane %v6378_v8, %v5276_v22 }
 0x24d   : > { %v3426_v56 = vrot.slane %v7623_v6, %v5276_v22  ;;  %v4061_v36 = vrot.slane %v4047_v53, %v5297_v27  ;;  %v2474_v20 = vsel %vm2418_vm5, %v1584_v41, %v2321_v19  ;;  %v4284_v58 = vcombine.low %v2471_v13, %v2472_v25  ;;  %v7633_v41 = vld [vmem:[#allocation31_spill] sm:$0xff] }
 0x24e   : > { %v2473_v37 = vsel %vm2418_vm5, %v7624_v0, %v2317_v45  ;;  %v3683_v57 = vsel %vm2418_vm5, %v7626_v43, %v7625_v24  ;;  %v3684_v49 = vsel %vm2418_vm5, %v7628_v52, %v7627_v9  ;;  %v7629_v51 = vcombine.high %v7626_v43, %v7626_v43  ;;  %v7642_v25 = vld [vmem:[#allocation59_spill] sm:$0xff]  ;;  %v7647_v43 = vld [vmem:[#allocation46_spill] sm:$0xff] }
 0x24f   : > { %v4285_v31 = vcombine.low %v2473_v37, %v2474_v20  ;;  %v4062_v1 = vcombine.low %v4054_v12, %v4061_v36  ;;  %v4292_v23 = vrot.slane %v4284_v58, %v5297_v27  ;;  %v7630_v44 = vcombine.high %v7628_v52, %v7628_v52  ;;  %v7648_v9 = vld [vmem:[#allocation23_spill] sm:$0xff] }
 0x250   : > { %v3685_v4 = vsel %vm2418_vm5, %v7629_v51, %v6402_v54  ;;  %v4063_v46 = vcombine.low %v3683_v57, %v3684_v49  ;;  %v7632_v17 = vcombine.high %v7631_v26, %v7631_v26  ;;  %v7634_v54 = vrot.slane %v7633_v41, %v5276_v22 }
 0x251   : > { %v3686_v42 = vsel %vm2418_vm5, %v7630_v44, %v3426_v56  ;;  %v4299_v8 = vrot.slane %v4285_v31, %v5297_v27  ;;  %4446 = vxpose.xlu1.b32.cont [12/16] (narrow) %v4062_v1, 8  ;;  %v7636_v48 = vrot.slane %v7631_v26, %v5276_v22  ;;  %v7639_v53 = vcombine.high %v7635_v3, %v7635_v3  ;;  %v7643_v56 = vld [vmem:[#allocation58_spill] sm:$0xff] }
 0x252   : > { %v4064_v18 = vcombine.low %v3685_v4, %v3686_v42  ;;  %v2337_v60 = vrot.slane %v7632_v17, %v5276_v22  ;;  %v2475_v63 = vsel %vm2418_vm5, %v7635_v3, %v7634_v54  ;;  %v4071_v38 = vrot.slane %v4063_v46, %v5297_v27  ;;  %v7650_v46 = vld [vmem:[#allocation34_spill] sm:$0xff] }
 0x253   : > { %v2476_v61 = vsel %vm2418_vm5, %v7637_v62, %v7636_v48  ;;  %v2477_v34 = vsel %vm2418_vm5, %v7639_v53, %v7638_v40  ;;  %v2637_v45 = vcombine.high %v7640_v16, %v7640_v16  ;;  %v4300_v55 = vcombine.low %v4292_v23, %v4299_v8  ;;  %v7656_v48 = vld [vmem:[#allocation55_spill] sm:$0xff] }
 0x254   : > { %v4078_v19 = vrot.slane %v4064_v18, %v5297_v27  ;;  %v7641_v12 = vcombine.high %v7637_v62, %v7637_v62  ;;  %v4301_v7 = vcombine.low %v2475_v63, %v2476_v61  ;;  %v3434_v6 = vrot.slane %v7642_v25, %v5276_v22  ;;  %v7651_v18 = vld [vmem:[#allocation32_spill] sm:$0xff]  ;;  %v7655_v63 = vld [vmem:[#allocation21_spill] sm:$0xff] }
 0x255   : > { %v7644_v36 = vcombine.high %v7643_v56, %v7643_v56  ;;  %v7645_v37 = vcombine.high %v7642_v25, %v7642_v25  ;;  %4476 = vxpose.xlu0.b32.cont [10/16] (narrow) %v4300_v55, 8  ;;  %v7646_v24 = vrot.slane %v7643_v56, %v5276_v22  ;;  %v1633_v52 = vcombine.high %v7648_v9, %v7648_v9 }
 0x256   : > { %v2478_v30 = vsel %vm2418_vm5, %v7641_v12, %v2337_v60  ;;  %v4079_v58 = vcombine.low %v4071_v38, %v4078_v19  ;;  %v4309_v31 = vrot.slane %v4301_v7, %v5297_v27  ;;  %v3688_v51 = vsel %vm2418_vm5, %v7640_v16, %v3434_v6  ;;  %v7659_v12 = vld [vmem:[#allocation53_spill] sm:$0xff]  ;;  %v7663_v6 = vld [vmem:[#allocation43_spill] sm:$0xff] }
 0x257   : > { %v4302_v13 = vcombine.low %v2477_v34, %v2478_v30  ;;  %v3438_v0 = vrot.slane %v7644_v36, %v5276_v22  ;;  %v3442_v20 = vrot.slane %v7645_v37, %v5276_v22  ;;  %v3687_v57 = vsel %vm2418_vm5, %v7647_v43, %v7646_v24  ;;  %v7661_v7 = vld [vmem:[#allocation41_spill] sm:$0xff] }
 0x258   : > { %v7649_v4 = vcombine.high %v7647_v43, %v7647_v43  ;;  %4447 = vxpose.xlu1.b32.cont [13/16] (narrow) %v4079_v58, 8  ;;  %v4080_v44 = vcombine.low %v3687_v57, %v3688_v51  ;;  %v2345_v8 = vrot.slane %v7650_v46, %v5276_v22  ;;  %v7652_v26 = vcombine.high %v7651_v18, %v7651_v18  ;;  %v7664_v37 = vld [vmem:[#allocation57_spill] sm:$0xff] }
 0x259   : > { %v4316_v49 = vrot.slane %v4302_v13, %v5297_v27  ;;  %v3690_v23 = vsel %vm2418_vm5, %v2637_v45, %v3442_v20  ;;  %v7653_v41 = vcombine.high %v7650_v46, %v7650_v46  ;;  %v7654_v3 = vrot.slane %v7651_v18, %v5276_v22 }
 0x25a   : > { %v3689_v1 = vsel %vm2418_vm5, %v7649_v4, %v3438_v0  ;;  %v2349_v17 = vrot.slane %v7652_v26, %v5276_v22  ;;  %v7657_v62 = vcombine.high %v7656_v48, %v7656_v48  ;;  %v4088_v40 = vrot.slane %v4080_v44, %v5297_v27 }
 0x25b   : > { %v4081_v42 = vcombine.low %v3689_v1, %v3690_v23  ;;  %v4317_v60 = vcombine.low %v4309_v31, %v4316_v49  ;;  %v2353_v54 = vrot.slane %v7653_v41, %v5276_v22  ;;  %v2479_v38 = vsel %vm2418_vm5, %v7655_v63, %v7654_v3 }
 0x25c   : > { %v3458_v61 = vrot.slane %v7657_v62, %v5276_v22  ;;  %v2480_v34 = vsel %vm2418_vm5, %v7648_v9, %v2345_v8  ;;  %v7658_v16 = vcombine.high %v7655_v63, %v7655_v63  ;;  %v7660_v30 = vrot.slane %v7659_v12, %v5276_v22  ;;  %v7675_v63 = vld [vmem:[#allocation42_spill] sm:$0xff] }
 0x25d   : > { %v4095_v53 = vrot.slane %v4081_v42, %v5297_v27  ;;  %4477 = vxpose.xlu0.b32.cont [11/16] (narrow) %v4317_v60, 8  ;;  %v2482_v55 = vsel %vm2418_vm5, %v1633_v52, %v2353_v54  ;;  %v4318_v19 = vcombine.low %v2479_v38, %v2480_v34  ;;  %v7662_v25 = vrot.slane %v7656_v48, %v5276_v22 }
 0x25e   : > { %v2481_v45 = vsel %vm2418_vm5, %v7658_v16, %v2349_v17  ;;  %v3691_v13 = vsel %vm2418_vm5, %v7661_v7, %v7660_v30  ;;  %v7665_v20 = vcombine.high %v7661_v7, %v7661_v7  ;;  %v7666_v31 = vcombine.high %v7663_v6, %v7663_v6 }
 0x25f   : > { %v3692_v56 = vsel %vm2418_vm5, %v7663_v6, %v7662_v25  ;;  %v4096_v36 = vcombine.low %v4088_v40, %v4095_v53  ;;  %v4319_v0 = vcombine.low %v2481_v45, %v2482_v55  ;;  %v4326_v43 = vrot.slane %v4318_v19, %v5297_v27  ;;  %v7679_v19 = vld [vmem:[#allocation64_spill] sm:$0xff] }
 0x260   : > { %v3693_v58 = vsel %vm2418_vm5, %v7665_v20, %v7664_v37  ;;  %v3694_v24 = vsel %vm2418_vm5, %v7666_v31, %v3458_v61  ;;  %v4097_v57 = vcombine.low %v3691_v13, %v3692_v56  ;;  %v3715_v52 = vsel %vm2418_vm5, %v6505_v2, %v3542_v47  ;;  %v7681_v13 = vld [vmem:[#allocation65_spill] sm:$0xff] }
 0x261   : > { %v4098_v9 = vcombine.low %v3693_v58, %v3694_v24  ;;  %4448 = vxpose.xlu1.b32.cont [14/16] (narrow) %v4096_v36, 8  ;;  %v4333_v49 = vrot.slane %v4319_v0, %v5297_v27  ;;  %v3716_v51 = vsel %vm2418_vm5, %v6515_v29, %v3546_v10  ;;  %v7667_v4 = vcombine.high %v6505_v2, %v6505_v2  ;;  %v7669_v10 = vld [vmem:[#allocation44_spill] sm:$0xff] }
 0x262   : > { %v3718_v47 = vsel %vm2418_vm5, %v7668_v32, %v6705_v35  ;;  %v4105_v23 = vrot.slane %v4097_v57, %v5297_v27  ;;  %v4335_v11 = vcombine.low %v3715_v52, %v3716_v51  ;;  %v2686_v8 = vcombine.high %v7669_v10, %v7669_v10  ;;  %v7670_v2 = vld [vmem:[#allocation56_spill] sm:$0xff] }
 0x263   : > { %v3717_v1 = vsel %vm2418_vm5, %v7667_v4, %v6698_v33  ;;  %v4112_v44 = vrot.slane %v4098_v9, %v5297_v27  ;;  %v4334_v46 = vcombine.low %v4326_v43, %v4333_v49  ;;  %v3466_v18 = vrot.slane %v7670_v2, %v5276_v22  ;;  %v7671_v33 = vld [vmem:[#allocation54_spill] sm:$0xff]  ;;  %v7686_v24 = vld [vmem:[#allocation60_spill] sm:$0xff] }
 0x264   : > { %v4336_v42 = vcombine.low %v3717_v1, %v3718_v47  ;;  %v7672_v26 = vcombine.high %v7671_v33, %v7671_v33  ;;  %v4343_v35 = vrot.slane %v4335_v11, %v5297_v27  ;;  %v7673_v41 = vcombine.high %v7670_v2, %v7670_v2  ;;  %v7688_v9 = vld [vmem:[#allocation62_spill] sm:$0xff] }
 0x265   : > { %v4113_v17 = vcombine.low %v4105_v23, %v4112_v44  ;;  %4478 = vxpose.xlu0.b32.cont [12/16] (narrow) %v4334_v46, 8  ;;  %v7674_v3 = vrot.slane %v7671_v33, %v5276_v22  ;;  %v3696_v48 = vsel %vm2418_vm5, %v7669_v10, %v3466_v18  ;;  %v7676_v62 = vcombine.high %v7675_v63, %v7675_v63  ;;  %v7691_v44 = vld [vmem:[#allocation63_spill] sm:$0xff] }
 0x266   : > { %v3470_v29 = vrot.slane %v7672_v26, %v5276_v22  ;;  %v4350_v60 = vrot.slane %v4336_v42, %v5297_v27  ;;  %v3474_v54 = vrot.slane %v7673_v41, %v5276_v22  ;;  %v7677_v40 = vcombine.high %v6687_v15, %v6687_v15 }
 0x267   : > { %v3695_v38 = vsel %vm2418_vm5, %v7675_v63, %v7674_v3  ;;  %4449 = vxpose.xlu1.b32.cont [15/16] (narrow) %v4113_v17, 8  ;;  %v7678_v55 = vrot.slane %v6677_v21, %v5276_v22  ;;  %v7680_v7 = vrot.slane %v6687_v15, %v5276_v22  ;;  %v7682_v6 = vcombine.high %v7679_v19, %v7679_v19 }
 0x268   : > { %v3697_v61 = vsel %vm2418_vm5, %v7676_v62, %v3470_v29  ;;  %v3570_v53 = vrot.slane %v7677_v40, %v5276_v22  ;;  %v4351_v34 = vcombine.low %v4343_v35, %v4350_v60  ;;  %v3698_v16 = vsel %vm2418_vm5, %v2686_v8, %v3474_v54  ;;  %v7695_v29 = vld [vmem:[#allocation61_spill] sm:$0xff] }
 0x269   : > { %v4114_v45 = vcombine.low %v3695_v38, %v3696_v48  ;;  %v3719_v12 = vsel %vm2418_vm5, %v7679_v19, %v7678_v55  ;;  %v4115_v30 = vcombine.low %v3697_v61, %v3698_v16  ;;  %v3720_v25 = vsel %vm2418_vm5, %v7681_v13, %v7680_v7 }
 0x26a   : > { %v3721_v56 = vsel %vm2418_vm5, %v7682_v6, %v6710_v59  ;;  %v7683_v36 = vcombine.high %v7681_v13, %v7681_v13  ;;  %v4352_v37 = vcombine.low %v3719_v12, %v3720_v25  ;;  %v7684_v15 = vcombine.high %v6616_v5, %v6616_v5  ;;  %4479 = vxpose.xlu0.b32.cont [13/16] (narrow) %v4351_v34, 8 }
 0x26b   : > { %v4122_v0 = vrot.slane %v4114_v45, %v5297_v27  ;;  %v4129_v31 = vrot.slane %v4115_v30, %v5297_v27  ;;  %v7685_v59 = vrot.slane %v6607_v28, %v5276_v22  ;;  %v7687_v57 = vrot.slane %v6616_v5, %v5276_v22 }
 0x26c   : > { %v3722_v21 = vsel %vm2418_vm5, %v7683_v36, %v3570_v53  ;;  %v3586_v58 = vrot.slane %v7684_v15, %v5276_v22  ;;  %v7689_v49 = vcombine.high %v7686_v24, %v7686_v24  ;;  %v4360_v4 = vrot.slane %v4352_v37, %v5297_v27 }
 0x26d   : > { %v4353_v20 = vcombine.low %v3721_v56, %v3722_v21  ;;  %v3723_v43 = vsel %vm2418_vm5, %v7686_v24, %v7685_v59  ;;  %v3724_v52 = vsel %vm2418_vm5, %v7688_v9, %v7687_v57  ;;  %v7690_v28 = vcombine.high %v7688_v9, %v7688_v9 }
 0x26e   : > { %v3725_v51 = vsel %vm2418_vm5, %v7689_v49, %v6634_v39  ;;  %v4369_v47 = vcombine.low %v3723_v43, %v3724_v52  ;;  %v4130_v5 = vcombine.low %v4122_v0, %v4129_v31  ;;  %v2882_v11 = vcombine.high %v7691_v44, %v7691_v44 }
 0x26f   : > { %v4367_v1 = vrot.slane %v4353_v20, %v5297_v27  ;;  %v3726_v32 = vsel %vm2418_vm5, %v7690_v28, %v3586_v58  ;;  %v3594_v42 = vrot.slane %v6625_v50, %v5276_v22  ;;  %v7692_v10 = vcombine.high %v6613_v14, %v6613_v14 }
 0x270   : > { %v4370_v23 = vcombine.low %v3725_v51, %v3726_v32  ;;  %v4377_v39 = vrot.slane %v4369_v47, %v5297_v27  ;;  %v7693_v2 = vcombine.high %v6625_v50, %v6625_v50  ;;  %4450 = vxpose.xlu1.b32.end [16/16] (narrow) %v4130_v5, 8  ;;  %v7694_v26 = vrot.slane %v6613_v14, %v5276_v22 }
 0x271   : > { %v4368_v46 = vcombine.low %v4360_v4, %v4367_v1  ;;  %v3598_v8 = vrot.slane %v7692_v10, %v5276_v22  ;;  %v3728_v35 = vsel %vm2418_vm5, %v7691_v44, %v3594_v42  ;;  %v7696_v60 = vcombine.high %v7695_v29, %v7695_v29 }
 0x272   : > { %v3602_v18 = vrot.slane %v7693_v2, %v5276_v22  ;;  %v4384_v33 = vrot.slane %v4370_v23, %v5297_v27  ;;  %v3727_v17 = vsel %vm2418_vm5, %v7695_v29, %v7694_v26 }
 0x273   : > { %4480 = vxpose.xlu0.b32.cont [14/16] (narrow) %v4368_v46, 8  ;;  %v3729_v50 = vsel %vm2418_vm5, %v7696_v60, %v3598_v8  ;;  %v4386_v54 = vcombine.low %v3727_v17, %v3728_v35 }
 0x274   : > { %v3730_v41 = vsel %vm2418_vm5, %v2882_v11, %v3602_v18  ;;  %v4385_v3 = vcombine.low %v4377_v39, %v4384_v33 }
 0x275   : > { %v4387_v63 = vcombine.low %v3729_v50, %v3730_v41  ;;  %v4394_v22 = vrot.slane %v4386_v54, %v5297_v27 }
 0x277   : > { %v4401_v14 = vrot.slane %v4387_v63, %v5297_v27  ;;  %4481 = vxpose.xlu0.b32.cont [15/16] (narrow) %v4385_v3, 8 }
 0x279   : > { %v4402_v38 = vcombine.low %v4394_v22, %v4401_v14 }
 0x27b   : > { %4482 = vxpose.xlu0.b32.end [16/16] (narrow) %v4402_v38, 8 }
 0x2b4   : > { %v4451_v48 = vpop.trf.xlu1 }
 0x2b5   : > { %4499 = vst [vmem:[%s242_s24] sm:$0xff] %v4451_v48 }
 0x2bf   : > { %v4483_v62 = vpop.trf.xlu0 }
 0x2c0   : > { %4500 = vst [vmem:[%s242_s24 + $0x8] sm:$0xff] %v4483_v62 }
 0x2c1 PF: > { %s15_s19 = sadd.s32 1, %s4926_s19   ;;  %s7697_s15 = smov %s4918_s17 }
 0x2c2   : > { %p12_p8 = scmp.ge.s32.totalorder %s15_s19, 10   ;;  %s7698_s16 = smov %s4922_s18 }
 0x2c3   : > { %s7699_s17 = smov %s7702_s20  ;;  %s7700_s18 = smov %s7706_s21 }
 0x2c4   :  { %14 = sbr.rel (!%p12_p8) target bundleno = 3 (0x3), region = 86 }

</bundles_post_ra>
